<compile_context>
chip_gen: v7x
topology: tpu7x:2x2x1
jax: 0.10.0
libtpu: 0.0.40
codegen_flags: <defaults>
</compile_context>

<pallas_src>
import functools

import numpy as np
import jax
import jax.numpy as jnp
from jax.experimental import pallas as pl
from jax.experimental.pallas import tpu as pltpu

# ----------------------------- config (small, consistent with the module) -----
CONFIG = dict(
    vocab_size=64,
    hidden_size=32,
    ffn_hidden_size=64,
    num_heads=4,
    num_kv_heads=2,
    rope_dim=8,
    rope_base=10000.0,
    dropout_rate=0.0,       # eval / inference: dropout == identity
    block_count=2,
    layer_norm_eps=1e-6,
)

LANE = 128


# ----------------------------- fused whole-model kernel ------------------------
def chat_model_kernel(x0_ref, mask_ref, cos_ref, sin_ref, rope_r_ref,
                      attn_norm_ref, wqkv_ref, wo_ref,
                      ffn_norm_ref, w_gate_ref, w_up_ref, w_down_ref,
                      final_norm_ref, head_ref, out_ref,
                      *, num_layers, num_heads, num_kv_heads, head_dim,
                      eps, mask_value):
    """Single invocation; batch folded into rows. Everything stays in VMEM/vregs."""
    f32 = jnp.float32
    bf16 = jnp.bfloat16
    H, KVH, D = num_heads, num_kv_heads, head_dim
    rep = H // KVH                                  # repeat_interleave: q-head h -> kv head h // rep
    BT = x0_ref.shape[0]                            # folded batch*seq rows
    scale = float(D) ** -0.5
    k_base = H * D
    v_base = (H + KVH) * D

    def mm(a, b):                                   # bf16 MXU matmul, f32 accumulate
        return jnp.dot(a.astype(bf16), b.astype(bf16), preferred_element_type=f32)

    def rmsnorm(v, w):                              # v: (BT, C) f32, w: (1, C)
        ms = jnp.mean(v * v, axis=-1, keepdims=True)
        return w * (v * jax.lax.rsqrt(ms + eps))

    x = x0_ref[...]                                 # (BT, C) pre-gathered embeddings
    neg = mask_ref[...] > 0.5                       # (rep*BT, BT): cross-batch OR j > i
    rope_r = rope_r_ref[...]                        # (W, W) block-diag rotate_half (bf16, exact +/-1)

    # Static unroll over layers (L is small).  TODO(synk): for large L move layers
    # onto an "arbitrary" grid axis with a VMEM accumulator so weights stream.
    for l in range(num_layers):
        cos_l = cos_ref[l]                          # (BT, W)
        sin_l = sin_ref[l]

        # ------------------- attention sub-block -------------------
        h_in = rmsnorm(x, attn_norm_ref[l])
        qkv = mm(h_in, wqkv_ref[l])                 # (BT, W)  W = (H + 2*KVH)*D
        # full-width RoPE (v columns: cos=1, sin=0 -> identity)
        qkv = qkv * cos_l + mm(qkv, rope_r) * sin_l

        outs = []
        for g in range(KVH):                        # K/V never replicated (GQA)
            q_cols = qkv[:, g * rep * D:(g + 1) * rep * D]           # (BT, rep*D)
            k_g = qkv[:, k_base + g * D:k_base + (g + 1) * D]        # (BT, D)
            v_g = qkv[:, v_base + g * D:v_base + (g + 1) * D]        # (BT, D)
            # stack the rep q-heads of this group along rows -> one score matmul
            q_stack = jnp.concatenate(
                [q_cols[:, r * D:(r + 1) * D] for r in range(rep)], axis=0)   # (rep*BT, D)
            s = jax.lax.dot_general(                     # contract last axes (no .T relayout)
                q_stack.astype(bf16), k_g.astype(bf16),
                dimension_numbers=(((1,), (1,)), ((), ())),
                preferred_element_type=f32) * scale       # (rep*BT, BT)
            s = jnp.where(neg, mask_value, s)             # causal + block-diagonal batch mask
            m = jnp.max(s, axis=-1, keepdims=True)
            e = jnp.exp(s - m)
            denom = jnp.sum(e, axis=-1, keepdims=True)
            o = mm(e, v_g)                                # unnormalized PV  (rep*BT, D)
            o = o * pl.reciprocal(denom, approx=True)     # divide folded onto the EUP
            for r in range(rep):
                outs.append(o[r * BT:(r + 1) * BT, :])    # head order g*rep + r
        attn_out = jnp.concatenate(outs, axis=-1)         # (BT, H*D)
        x = x + mm(attn_out, wo_ref[l])                   # ONE o_proj matmul + residual

        # ------------------- SwiGLU FFN sub-block -------------------
        h_f = rmsnorm(x, ffn_norm_ref[l])
        gate = mm(h_f, w_gate_ref[l])                     # (BT, F)
        up = mm(h_f, w_up_ref[l])                         # (BT, F)
        x = x + mm(jax.nn.silu(gate) * up, w_down_ref[l])

    # ------------------- final norm + LM head (lane-dense, padded to 128) ------
    xf = rmsnorm(x, final_norm_ref[...])
    out_ref[...] = mm(xf, head_ref[...])                  # (BT, 128)


# ----------------------------- host-side precompute (once per forward) ---------
def _rotate_half_block_matrix(width, n_rot_heads, head_dim, rope_dim):
    # torch rotate_half (interleaved):  rot[j] = -x[2j+1],  rot[half+m] = x[2m]
    # expressed as a constant block-diagonal matrix (one P per q/k head; zero for v)
    # so the kernel applies it to the whole qkv slab with one matmul.
    p = np.zeros((head_dim, head_dim), np.float32)
    half = rope_dim // 2
    for j in range(half):
        p[2 * j + 1, j] = -1.0
        p[2 * j, half + j] = 1.0
    r = np.zeros((width, width), np.float32)
    for h in range(n_rot_heads):
        r[h * head_dim:(h + 1) * head_dim, h * head_dim:(h + 1) * head_dim] = p
    return r


def _rope_tables(seq_len, batch, head_dim, rope_dim, base, rope_scales,
                 num_heads, num_kv_heads, offset=0):
    """(L, B*T, W) cos/sin over the fused qkv slab; v columns are identity."""
    L = rope_scales.shape[0]
    inv_freq = 1.0 / (base ** (jnp.arange(0, rope_dim, 2, dtype=jnp.float32) / rope_dim))
    pos = jnp.arange(offset, offset + seq_len, dtype=jnp.float32)
    freqs = pos[:, None] * inv_freq[None, :]                    # (T, rope_dim//2)
    emb = jnp.concatenate([freqs, freqs], axis=-1)              # (T, rope_dim)  == torch cat((freqs, freqs))
    emb = emb[None, :, :] * rope_scales[:, None, None]          # (L, T, rope_dim) learned per-block scale
    cos, sin = jnp.cos(emb), jnp.sin(emb)
    if rope_dim < head_dim:                                     # cols >= rope_dim pass through
        pad = head_dim - rope_dim
        cos = jnp.concatenate([cos, jnp.ones((L, seq_len, pad), jnp.float32)], axis=-1)
        sin = jnp.concatenate([sin, jnp.zeros((L, seq_len, pad), jnp.float32)], axis=-1)
    kv_w = num_kv_heads * head_dim
    cos_full = jnp.concatenate([jnp.tile(cos, (1, 1, num_heads)),
                                jnp.tile(cos, (1, 1, num_kv_heads)),
                                jnp.ones((L, seq_len, kv_w), jnp.float32)], axis=-1)
    sin_full = jnp.concatenate([jnp.tile(sin, (1, 1, num_heads)),
                                jnp.tile(sin, (1, 1, num_kv_heads)),
                                jnp.zeros((L, seq_len, kv_w), jnp.float32)], axis=-1)
    # rows are batch-folded (b*T + t) -> replicate the T-row table per batch
    return jnp.tile(cos_full, (1, batch, 1)), jnp.tile(sin_full, (1, batch, 1))


def _stacked_causal_mask(batch, seq_len, rep):
    """(rep*B*T, B*T) float mask: 1.0 where masked (cross-batch or future token)."""
    bt = batch * seq_len
    r = np.arange(rep * bt)[:, None]
    c = np.arange(bt)[None, :]
    q_b, q_t = (r % bt) // seq_len, r % seq_len
    k_b, k_t = c // seq_len, c % seq_len
    masked = (q_b != k_b) | (k_t > q_t)
    return jnp.asarray(masked.astype(np.float32))


# ----------------------------- model forward -----------------------------------
def chat_model_forward(params, input_ids, cfg, pos_offset=0):
    # TODO(synk): attention_mask (padding) and the labels/cross-entropy loss path
    # are not implemented — causal-mask inference path only.
    B, T = input_ids.shape
    C = cfg["hidden_size"]
    V = cfg["vocab_size"]
    H = cfg["num_heads"]
    KVH = cfg["num_kv_heads"]
    D = C // H
    F = cfg["ffn_hidden_size"]
    L = cfg["block_count"]
    rep = H // KVH
    rope_dim = min(cfg["rope_dim"], D)
    W = (H + 2 * KVH) * D
    BT = B * T
    V_pad = max(LANE, ((V + LANE - 1) // LANE) * LANE)
    bf16 = jnp.bfloat16

    # embedding gather in XLA (review: drop in-kernel one-hot matmul)
    x0 = jnp.take(params["embed"], input_ids.astype(jnp.int32).reshape(-1), axis=0)  # (BT, C)

    cos, sin = _rope_tables(T, B, D, rope_dim, cfg["rope_base"], params["rope_scale"],
                            H, KVH, offset=pos_offset)                               # (L, BT, W)
    rope_r = jnp.asarray(_rotate_half_block_matrix(W, H + KVH, D, rope_dim), bf16)   # (W, W)
    maskf = _stacked_causal_mask(B, T, rep)                                           # (rep*BT, BT)

    head_pad = jnp.zeros((C, V_pad), jnp.float32).at[:, :V].set(params["head_w"]).astype(bf16)

    operands = (x0, maskf, cos, sin, rope_r,
                params["attn_norm_w"],
                params["wqkv"].astype(bf16), params["wo"].astype(bf16),
                params["ffn_norm_w"],
                params["w_gate"].astype(bf16), params["w_upin"].astype(bf16),
                params["w_down"].astype(bf16),
                params["norm_w"], head_pad)

    def full(a):
        nd = a.ndim
        return pl.BlockSpec(a.shape, lambda i, nd=nd: (0,) * nd)   # whole array VMEM-resident

    in_specs = [full(a) for a in operands]

    per_layer = (2 * BT * C * W          # fused qkv projection
                 + 2 * BT * W * W        # full-width rotate_half matmul
                 + 4 * H * BT * BT * D   # scores + PV (batch-folded)
                 + 2 * BT * H * D * C    # o_proj
                 + 6 * BT * C * F)       # gate / up / down
    flops = int(L * per_layer + 2 * BT * C * V_pad)
    transcendentals = int(L * (H * BT * BT + BT * F))
    bytes_accessed = int(sum(int(a.size) * a.dtype.itemsize for a in operands)
                         + BT * V_pad * 4)

    kernel = functools.partial(
        chat_model_kernel,
        num_layers=L, num_heads=H, num_kv_heads=KVH, head_dim=D,
        eps=cfg["layer_norm_eps"],
        mask_value=float(jnp.finfo(jnp.float32).min))

    out = pl.pallas_call(
        kernel,
        out_shape=jax.ShapeDtypeStruct((BT, V_pad), jnp.float32),
        grid=(1,),                                  # batch folded; single step
        in_specs=in_specs,
        out_specs=pl.BlockSpec((BT, V_pad), lambda i: (0, 0)),
        compiler_params=pltpu.CompilerParams(dimension_semantics=("arbitrary",)),
        cost_estimate=pl.CostEstimate(flops=flops,
                                      transcendentals=transcendentals,
                                      bytes_accessed=bytes_accessed),
    )(*operands)

    logits = out.reshape(B, T, V_pad)[:, :, :V]     # strip lane padding
    return {"loss": None, "logits": logits}


# ----------------------------- deterministic parameter init --------------------
def init_params(cfg, key):
    C = cfg["hidden_size"]
    V = cfg["vocab_size"]
    H = cfg["num_heads"]
    KVH = cfg["num_kv_heads"]
    D = C // H
    F = cfg["ffn_hidden_size"]
    L = cfg["block_count"]
    W = (H + 2 * KVH) * D

    keys = iter(jax.random.split(key, 8))

    def w(shape, scale=0.02):
        return scale * jax.random.normal(next(keys), shape, dtype=jnp.float32)

    return dict(
        embed=w((V, C)),
        head_w=w((C, V)),                         # stored transposed: logits = x @ W
        norm_w=jnp.ones((1, C), jnp.float32),
        attn_norm_w=jnp.ones((L, 1, C), jnp.float32),
        ffn_norm_w=jnp.ones((L, 1, C), jnp.float32),
        rope_scale=jnp.ones((L,), jnp.float32),   # per-block learned RoPE scale
        wqkv=w((L, C, W)),                        # fused [Wq | Wk | Wv], stored transposed
        wo=w((L, H * D, C)),
        w_gate=w((L, C, F)),                      # in_proj, first half (gate)
        w_upin=w((L, C, F)),                      # in_proj, second half (up)
        w_down=w((L, F, C)),                      # up_proj (down projection)
    )


# ----------------------------- main ---------------------------------------------
if __name__ == "__main__":
    key = jax.random.PRNGKey(0)
    pkey, dkey = jax.random.split(key)

    params = init_params(CONFIG, pkey)

    B, T = 2, 8
    input_ids = jax.random.randint(dkey, (B, T), 0, CONFIG["vocab_size"], dtype=jnp.int32)

    out = chat_model_forward(params, input_ids, CONFIG)
    logits = jax.block_until_ready(out["logits"])

    assert logits.shape == (B, T, CONFIG["vocab_size"])
    assert bool(jnp.all(jnp.isfinite(logits)))
    print("KERNEL_OK")
</pallas_src>

<mosaic_0001>
module attributes {stable_mosaic.version = 11 : i64} {
  func.func @chat_model_kernel(%arg0: i32, %arg1: memref<16x32xf32, #tpu.memory_space<vmem>>, %arg2: memref<32x16xf32, #tpu.memory_space<vmem>>, %arg3: memref<2x16x64xf32, #tpu.memory_space<vmem>>, %arg4: memref<2x16x64xf32, #tpu.memory_space<vmem>>, %arg5: memref<64x64xbf16, #tpu.memory_space<vmem>>, %arg6: memref<2x1x32xf32, #tpu.memory_space<vmem>>, %arg7: memref<2x32x64xbf16, #tpu.memory_space<vmem>>, %arg8: memref<2x32x32xbf16, #tpu.memory_space<vmem>>, %arg9: memref<2x1x32xf32, #tpu.memory_space<vmem>>, %arg10: memref<2x32x64xbf16, #tpu.memory_space<vmem>>, %arg11: memref<2x32x64xbf16, #tpu.memory_space<vmem>>, %arg12: memref<2x64x32xbf16, #tpu.memory_space<vmem>>, %arg13: memref<1x32xf32, #tpu.memory_space<vmem>>, %arg14: memref<32x128xbf16, #tpu.memory_space<vmem>>, %arg15: memref<16x128xf32, #tpu.memory_space<vmem>>) attributes {dimension_semantics = [#tpu.dimension_semantics<arbitrary>], iteration_bounds = array<i64: 1>, scalar_prefetch = 0 : i64, scratch_operands = 0 : i64, tpu.core_type = #tpu.core_type<tc>, window_params = [{pipeline_mode = #tpu.pipeline_mode<synchronous>, transform_indices = @transform_0, window_bounds = array<i64: 16, 32>}, {pipeline_mode = #tpu.pipeline_mode<synchronous>, transform_indices = @transform_1, window_bounds = array<i64: 32, 16>}, {pipeline_mode = #tpu.pipeline_mode<synchronous>, transform_indices = @transform_2, window_bounds = array<i64: 2, 16, 64>}, {pipeline_mode = #tpu.pipeline_mode<synchronous>, transform_indices = @transform_3, window_bounds = array<i64: 2, 16, 64>}, {pipeline_mode = #tpu.pipeline_mode<synchronous>, transform_indices = @transform_4, window_bounds = array<i64: 64, 64>}, {pipeline_mode = #tpu.pipeline_mode<synchronous>, transform_indices = @transform_5, window_bounds = array<i64: 2, 1, 32>}, {pipeline_mode = #tpu.pipeline_mode<synchronous>, transform_indices = @transform_6, window_bounds = array<i64: 2, 32, 64>}, {pipeline_mode = #tpu.pipeline_mode<synchronous>, transform_indices = @transform_7, window_bounds = array<i64: 2, 32, 32>}, {pipeline_mode = #tpu.pipeline_mode<synchronous>, transform_indices = @transform_8, window_bounds = array<i64: 2, 1, 32>}, {pipeline_mode = #tpu.pipeline_mode<synchronous>, transform_indices = @transform_9, window_bounds = array<i64: 2, 32, 64>}, {pipeline_mode = #tpu.pipeline_mode<synchronous>, transform_indices = @transform_10, window_bounds = array<i64: 2, 32, 64>}, {pipeline_mode = #tpu.pipeline_mode<synchronous>, transform_indices = @transform_11, window_bounds = array<i64: 2, 64, 32>}, {pipeline_mode = #tpu.pipeline_mode<synchronous>, transform_indices = @transform_12, window_bounds = array<i64: 1, 32>}, {pipeline_mode = #tpu.pipeline_mode<synchronous>, transform_indices = @transform_13, window_bounds = array<i64: 32, 128>}, {pipeline_mode = #tpu.pipeline_mode<synchronous>, transform_indices = @transform_14, window_bounds = array<i64: 16, 128>}]} {
    %c0 = arith.constant 0 : index
    %c0_0 = arith.constant 0 : index
    %0 = vector.load %arg1[%c0, %c0_0] : memref<16x32xf32, #tpu.memory_space<vmem>>, vector<16x32xf32>
    %c0_1 = arith.constant 0 : index
    %c0_2 = arith.constant 0 : index
    %1 = vector.load %arg2[%c0_1, %c0_2] : memref<32x16xf32, #tpu.memory_space<vmem>>, vector<32x16xf32>
    %cst = arith.constant 5.000000e-01 : f32
    %2 = vector.broadcast %cst : f32 to vector<32x16xf32>
    %3 = arith.cmpf ogt, %1, %2 : vector<32x16xf32>
    %c0_3 = arith.constant 0 : index
    %c0_4 = arith.constant 0 : index
    %4 = vector.load %arg5[%c0_3, %c0_4] : memref<64x64xbf16, #tpu.memory_space<vmem>>, vector<64x64xbf16>
    %c0_5 = arith.constant 0 : index
    %c0_6 = arith.constant 0 : index
    %c0_7 = arith.constant 0 : index
    %5 = vector.load %arg3[%c0_5, %c0_6, %c0_7] : memref<2x16x64xf32, #tpu.memory_space<vmem>>, vector<1x16x64xf32>
    %6 = vector.shape_cast %5 : vector<1x16x64xf32> to vector<16x64xf32>
    %c0_8 = arith.constant 0 : index
    %c0_9 = arith.constant 0 : index
    %c0_10 = arith.constant 0 : index
    %7 = vector.load %arg4[%c0_8, %c0_9, %c0_10] : memref<2x16x64xf32, #tpu.memory_space<vmem>>, vector<1x16x64xf32>
    %8 = vector.shape_cast %7 : vector<1x16x64xf32> to vector<16x64xf32>
    %c0_11 = arith.constant 0 : index
    %c0_12 = arith.constant 0 : index
    %c0_13 = arith.constant 0 : index
    %9 = vector.load %arg6[%c0_11, %c0_12, %c0_13] : memref<2x1x32xf32, #tpu.memory_space<vmem>>, vector<1x1x32xf32>
    %10 = vector.shape_cast %9 : vector<1x1x32xf32> to vector<1x32xf32>
    %11 = arith.mulf %0, %0 : vector<16x32xf32>
    %cst_14 = arith.constant dense<0.000000e+00> : vector<16xf32>
    %12 = vector.multi_reduction <add>, %11, %cst_14 [1] : vector<16x32xf32> to vector<16xf32>
    %13 = vector.shape_cast %12 : vector<16xf32> to vector<16x1xf32>
    %cst_15 = arith.constant 3.200000e+01 : f32
    %14 = vector.broadcast %cst_15 : f32 to vector<16x1xf32>
    %15 = arith.divf %13, %14 : vector<16x1xf32>
    %cst_16 = arith.constant 9.99999997E-7 : f32
    %16 = vector.broadcast %cst_16 : f32 to vector<16x1xf32>
    %17 = arith.addf %15, %16 : vector<16x1xf32>
    %18 = math.rsqrt %17 : vector<16x1xf32>
    %19 = vector.broadcast %18 : vector<16x1xf32> to vector<16x32xf32>
    %20 = arith.mulf %0, %19 : vector<16x32xf32>
    %21 = vector.broadcast %10 : vector<1x32xf32> to vector<16x32xf32>
    %22 = arith.mulf %21, %20 : vector<16x32xf32>
    %c0_17 = arith.constant 0 : index
    %c0_18 = arith.constant 0 : index
    %c0_19 = arith.constant 0 : index
    %23 = vector.load %arg7[%c0_17, %c0_18, %c0_19] : memref<2x32x64xbf16, #tpu.memory_space<vmem>>, vector<1x32x64xbf16>
    %24 = vector.shape_cast %23 : vector<1x32x64xbf16> to vector<32x64xbf16>
    %25 = arith.truncf %22 : vector<16x32xf32> to vector<16x32xbf16>
    %cst_20 = arith.constant dense<0.000000e+00> : vector<16x64xf32>
    %26 = tpu.matmul %25, %24, %cst_20 {dimension_numbers = #tpu.dot_dimension_numbers<[1], [0], [0], [1], [0, 0, 1, 1], [], []>} : vector<16x32xbf16>, vector<32x64xbf16>, vector<16x64xf32> -> vector<16x64xf32>
    %27 = arith.mulf %26, %6 : vector<16x64xf32>
    %28 = arith.truncf %26 : vector<16x64xf32> to vector<16x64xbf16>
    %cst_21 = arith.constant dense<0.000000e+00> : vector<16x64xf32>
    %29 = tpu.matmul %28, %4, %cst_21 {dimension_numbers = #tpu.dot_dimension_numbers<[1], [0], [0], [1], [0, 0, 1, 1], [], []>} : vector<16x64xbf16>, vector<64x64xbf16>, vector<16x64xf32> -> vector<16x64xf32>
    %30 = arith.mulf %29, %8 : vector<16x64xf32>
    %31 = arith.addf %27, %30 : vector<16x64xf32>
    %32 = vector.extract_strided_slice %31 {offsets = [0, 0], sizes = [16, 16], strides = [1, 1]} : vector<16x64xf32> to vector<16x16xf32>
    %33 = vector.extract_strided_slice %31 {offsets = [0, 32], sizes = [16, 8], strides = [1, 1]} : vector<16x64xf32> to vector<16x8xf32>
    %34 = vector.extract_strided_slice %31 {offsets = [0, 48], sizes = [16, 8], strides = [1, 1]} : vector<16x64xf32> to vector<16x8xf32>
    %35 = vector.extract_strided_slice %32 {offsets = [0, 0], sizes = [16, 8], strides = [1, 1]} : vector<16x16xf32> to vector<16x8xf32>
    %36 = vector.extract_strided_slice %32 {offsets = [0, 8], sizes = [16, 8], strides = [1, 1]} : vector<16x16xf32> to vector<16x8xf32>
    %37 = tpu.concatenate %35, %36 in 0 : vector<16x8xf32>, vector<16x8xf32> -> vector<32x8xf32>
    %38 = arith.truncf %37 : vector<32x8xf32> to vector<32x8xbf16>
    %39 = arith.truncf %33 : vector<16x8xf32> to vector<16x8xbf16>
    %cst_22 = arith.constant dense<0.000000e+00> : vector<32x16xf32>
    %40 = tpu.matmul %38, %39, %cst_22 {dimension_numbers = #tpu.dot_dimension_numbers<[1], [1], [0], [0], [0, 0, 1, 0], [], []>} : vector<32x8xbf16>, vector<16x8xbf16>, vector<32x16xf32> -> vector<32x16xf32>
    %cst_23 = arith.constant 0.353553385 : f32
    %41 = vector.broadcast %cst_23 : f32 to vector<32x16xf32>
    %42 = arith.mulf %40, %41 : vector<32x16xf32>
    %cst_24 = arith.constant -3.40282347E+38 : f32
    %43 = vector.broadcast %cst_24 : f32 to vector<32x16xf32>
    %44 = arith.select %3, %43, %42 : vector<32x16xi1>, vector<32x16xf32>
    %cst_25 = arith.constant dense<0xFF800000> : vector<32xf32>
    %45 = vector.multi_reduction <maximumf>, %44, %cst_25 [1] : vector<32x16xf32> to vector<32xf32>
    %46 = vector.shape_cast %45 : vector<32xf32> to vector<32x1xf32>
    %47 = vector.broadcast %46 : vector<32x1xf32> to vector<32x16xf32>
    %48 = arith.subf %44, %47 : vector<32x16xf32>
    %49 = math.exp %48 : vector<32x16xf32>
    %cst_26 = arith.constant dense<0.000000e+00> : vector<32xf32>
    %50 = vector.multi_reduction <add>, %49, %cst_26 [1] : vector<32x16xf32> to vector<32xf32>
    %51 = vector.shape_cast %50 : vector<32xf32> to vector<32x1xf32>
    %52 = arith.truncf %49 : vector<32x16xf32> to vector<32x16xbf16>
    %53 = arith.truncf %34 : vector<16x8xf32> to vector<16x8xbf16>
    %cst_27 = arith.constant dense<0.000000e+00> : vector<32x8xf32>
    %54 = tpu.matmul %52, %53, %cst_27 {dimension_numbers = #tpu.dot_dimension_numbers<[1], [0], [0], [1], [0, 0, 1, 1], [], []>} : vector<32x16xbf16>, vector<16x8xbf16>, vector<32x8xf32> -> vector<32x8xf32>
    %55 = tpu.reciprocal %51 {approx = true} : vector<32x1xf32> -> vector<32x1xf32>
    %56 = vector.broadcast %55 : vector<32x1xf32> to vector<32x8xf32>
    %57 = arith.mulf %54, %56 : vector<32x8xf32>
    %58 = vector.extract_strided_slice %57 {offsets = [0, 0], sizes = [16, 8], strides = [1, 1]} : vector<32x8xf32> to vector<16x8xf32>
    %59 = vector.extract_strided_slice %57 {offsets = [16, 0], sizes = [16, 8], strides = [1, 1]} : vector<32x8xf32> to vector<16x8xf32>
    %60 = vector.extract_strided_slice %31 {offsets = [0, 16], sizes = [16, 16], strides = [1, 1]} : vector<16x64xf32> to vector<16x16xf32>
    %61 = vector.extract_strided_slice %31 {offsets = [0, 40], sizes = [16, 8], strides = [1, 1]} : vector<16x64xf32> to vector<16x8xf32>
    %62 = vector.extract_strided_slice %31 {offsets = [0, 56], sizes = [16, 8], strides = [1, 1]} : vector<16x64xf32> to vector<16x8xf32>
    %63 = vector.extract_strided_slice %60 {offsets = [0, 0], sizes = [16, 8], strides = [1, 1]} : vector<16x16xf32> to vector<16x8xf32>
    %64 = vector.extract_strided_slice %60 {offsets = [0, 8], sizes = [16, 8], strides = [1, 1]} : vector<16x16xf32> to vector<16x8xf32>
    %65 = tpu.concatenate %63, %64 in 0 : vector<16x8xf32>, vector<16x8xf32> -> vector<32x8xf32>
    %66 = arith.truncf %65 : vector<32x8xf32> to vector<32x8xbf16>
    %67 = arith.truncf %61 : vector<16x8xf32> to vector<16x8xbf16>
    %cst_28 = arith.constant dense<0.000000e+00> : vector<32x16xf32>
    %68 = tpu.matmul %66, %67, %cst_28 {dimension_numbers = #tpu.dot_dimension_numbers<[1], [1], [0], [0], [0, 0, 1, 0], [], []>} : vector<32x8xbf16>, vector<16x8xbf16>, vector<32x16xf32> -> vector<32x16xf32>
    %cst_29 = arith.constant 0.353553385 : f32
    %69 = vector.broadcast %cst_29 : f32 to vector<32x16xf32>
    %70 = arith.mulf %68, %69 : vector<32x16xf32>
    %cst_30 = arith.constant -3.40282347E+38 : f32
    %71 = vector.broadcast %cst_30 : f32 to vector<32x16xf32>
    %72 = arith.select %3, %71, %70 : vector<32x16xi1>, vector<32x16xf32>
    %cst_31 = arith.constant dense<0xFF800000> : vector<32xf32>
    %73 = vector.multi_reduction <maximumf>, %72, %cst_31 [1] : vector<32x16xf32> to vector<32xf32>
    %74 = vector.shape_cast %73 : vector<32xf32> to vector<32x1xf32>
    %75 = vector.broadcast %74 : vector<32x1xf32> to vector<32x16xf32>
    %76 = arith.subf %72, %75 : vector<32x16xf32>
    %77 = math.exp %76 : vector<32x16xf32>
    %cst_32 = arith.constant dense<0.000000e+00> : vector<32xf32>
    %78 = vector.multi_reduction <add>, %77, %cst_32 [1] : vector<32x16xf32> to vector<32xf32>
    %79 = vector.shape_cast %78 : vector<32xf32> to vector<32x1xf32>
    %80 = arith.truncf %77 : vector<32x16xf32> to vector<32x16xbf16>
    %81 = arith.truncf %62 : vector<16x8xf32> to vector<16x8xbf16>
    %cst_33 = arith.constant dense<0.000000e+00> : vector<32x8xf32>
    %82 = tpu.matmul %80, %81, %cst_33 {dimension_numbers = #tpu.dot_dimension_numbers<[1], [0], [0], [1], [0, 0, 1, 1], [], []>} : vector<32x16xbf16>, vector<16x8xbf16>, vector<32x8xf32> -> vector<32x8xf32>
    %83 = tpu.reciprocal %79 {approx = true} : vector<32x1xf32> -> vector<32x1xf32>
    %84 = vector.broadcast %83 : vector<32x1xf32> to vector<32x8xf32>
    %85 = arith.mulf %82, %84 : vector<32x8xf32>
    %86 = vector.extract_strided_slice %85 {offsets = [0, 0], sizes = [16, 8], strides = [1, 1]} : vector<32x8xf32> to vector<16x8xf32>
    %87 = vector.extract_strided_slice %85 {offsets = [16, 0], sizes = [16, 8], strides = [1, 1]} : vector<32x8xf32> to vector<16x8xf32>
    %88 = tpu.concatenate %58, %59, %86, %87 in 1 : vector<16x8xf32>, vector<16x8xf32>, vector<16x8xf32>, vector<16x8xf32> -> vector<16x32xf32>
    %c0_34 = arith.constant 0 : index
    %c0_35 = arith.constant 0 : index
    %c0_36 = arith.constant 0 : index
    %89 = vector.load %arg8[%c0_34, %c0_35, %c0_36] : memref<2x32x32xbf16, #tpu.memory_space<vmem>>, vector<1x32x32xbf16>
    %90 = vector.shape_cast %89 : vector<1x32x32xbf16> to vector<32x32xbf16>
    %91 = arith.truncf %88 : vector<16x32xf32> to vector<16x32xbf16>
    %cst_37 = arith.constant dense<0.000000e+00> : vector<16x32xf32>
    %92 = tpu.matmul %91, %90, %cst_37 {dimension_numbers = #tpu.dot_dimension_numbers<[1], [0], [0], [1], [0, 0, 1, 1], [], []>} : vector<16x32xbf16>, vector<32x32xbf16>, vector<16x32xf32> -> vector<16x32xf32>
    %93 = arith.addf %0, %92 : vector<16x32xf32>
    %c0_38 = arith.constant 0 : index
    %c0_39 = arith.constant 0 : index
    %c0_40 = arith.constant 0 : index
    %94 = vector.load %arg9[%c0_38, %c0_39, %c0_40] : memref<2x1x32xf32, #tpu.memory_space<vmem>>, vector<1x1x32xf32>
    %95 = vector.shape_cast %94 : vector<1x1x32xf32> to vector<1x32xf32>
    %96 = arith.mulf %93, %93 : vector<16x32xf32>
    %cst_41 = arith.constant dense<0.000000e+00> : vector<16xf32>
    %97 = vector.multi_reduction <add>, %96, %cst_41 [1] : vector<16x32xf32> to vector<16xf32>
    %98 = vector.shape_cast %97 : vector<16xf32> to vector<16x1xf32>
    %cst_42 = arith.constant 3.200000e+01 : f32
    %99 = vector.broadcast %cst_42 : f32 to vector<16x1xf32>
    %100 = arith.divf %98, %99 : vector<16x1xf32>
    %cst_43 = arith.constant 9.99999997E-7 : f32
    %101 = vector.broadcast %cst_43 : f32 to vector<16x1xf32>
    %102 = arith.addf %100, %101 : vector<16x1xf32>
    %103 = math.rsqrt %102 : vector<16x1xf32>
    %104 = vector.broadcast %103 : vector<16x1xf32> to vector<16x32xf32>
    %105 = arith.mulf %93, %104 : vector<16x32xf32>
    %106 = vector.broadcast %95 : vector<1x32xf32> to vector<16x32xf32>
    %107 = arith.mulf %106, %105 : vector<16x32xf32>
    %c0_44 = arith.constant 0 : index
    %c0_45 = arith.constant 0 : index
    %c0_46 = arith.constant 0 : index
    %108 = vector.load %arg10[%c0_44, %c0_45, %c0_46] : memref<2x32x64xbf16, #tpu.memory_space<vmem>>, vector<1x32x64xbf16>
    %109 = vector.shape_cast %108 : vector<1x32x64xbf16> to vector<32x64xbf16>
    %110 = arith.truncf %107 : vector<16x32xf32> to vector<16x32xbf16>
    %cst_47 = arith.constant dense<0.000000e+00> : vector<16x64xf32>
    %111 = tpu.matmul %110, %109, %cst_47 {dimension_numbers = #tpu.dot_dimension_numbers<[1], [0], [0], [1], [0, 0, 1, 1], [], []>} : vector<16x32xbf16>, vector<32x64xbf16>, vector<16x64xf32> -> vector<16x64xf32>
    %c0_48 = arith.constant 0 : index
    %c0_49 = arith.constant 0 : index
    %c0_50 = arith.constant 0 : index
    %112 = vector.load %arg11[%c0_48, %c0_49, %c0_50] : memref<2x32x64xbf16, #tpu.memory_space<vmem>>, vector<1x32x64xbf16>
    %113 = vector.shape_cast %112 : vector<1x32x64xbf16> to vector<32x64xbf16>
    %114 = arith.truncf %107 : vector<16x32xf32> to vector<16x32xbf16>
    %cst_51 = arith.constant dense<0.000000e+00> : vector<16x64xf32>
    %115 = tpu.matmul %114, %113, %cst_51 {dimension_numbers = #tpu.dot_dimension_numbers<[1], [0], [0], [1], [0, 0, 1, 1], [], []>} : vector<16x32xbf16>, vector<32x64xbf16>, vector<16x64xf32> -> vector<16x64xf32>
    %116 = arith.negf %111 : vector<16x64xf32>
    %117 = math.exp %116 : vector<16x64xf32>
    %cst_52 = arith.constant 1.000000e+00 : f32
    %118 = vector.broadcast %cst_52 : f32 to vector<16x64xf32>
    %119 = arith.addf %118, %117 : vector<16x64xf32>
    %120 = arith.divf %118, %119 : vector<16x64xf32>
    %121 = arith.mulf %111, %120 : vector<16x64xf32>
    %122 = arith.mulf %121, %115 : vector<16x64xf32>
    %c0_53 = arith.constant 0 : index
    %c0_54 = arith.constant 0 : index
    %c0_55 = arith.constant 0 : index
    %123 = vector.load %arg12[%c0_53, %c0_54, %c0_55] : memref<2x64x32xbf16, #tpu.memory_space<vmem>>, vector<1x64x32xbf16>
    %124 = vector.shape_cast %123 : vector<1x64x32xbf16> to vector<64x32xbf16>
    %125 = arith.truncf %122 : vector<16x64xf32> to vector<16x64xbf16>
    %cst_56 = arith.constant dense<0.000000e+00> : vector<16x32xf32>
    %126 = tpu.matmul %125, %124, %cst_56 {dimension_numbers = #tpu.dot_dimension_numbers<[1], [0], [0], [1], [0, 0, 1, 1], [], []>} : vector<16x64xbf16>, vector<64x32xbf16>, vector<16x32xf32> -> vector<16x32xf32>
    %127 = arith.addf %93, %126 : vector<16x32xf32>
    %c1 = arith.constant 1 : index
    %c0_57 = arith.constant 0 : index
    %c0_58 = arith.constant 0 : index
    %128 = vector.load %arg3[%c1, %c0_57, %c0_58] : memref<2x16x64xf32, #tpu.memory_space<vmem>>, vector<1x16x64xf32>
    %129 = vector.shape_cast %128 : vector<1x16x64xf32> to vector<16x64xf32>
    %c1_59 = arith.constant 1 : index
    %c0_60 = arith.constant 0 : index
    %c0_61 = arith.constant 0 : index
    %130 = vector.load %arg4[%c1_59, %c0_60, %c0_61] : memref<2x16x64xf32, #tpu.memory_space<vmem>>, vector<1x16x64xf32>
    %131 = vector.shape_cast %130 : vector<1x16x64xf32> to vector<16x64xf32>
    %c1_62 = arith.constant 1 : index
    %c0_63 = arith.constant 0 : index
    %c0_64 = arith.constant 0 : index
    %132 = vector.load %arg6[%c1_62, %c0_63, %c0_64] : memref<2x1x32xf32, #tpu.memory_space<vmem>>, vector<1x1x32xf32>
    %133 = vector.shape_cast %132 : vector<1x1x32xf32> to vector<1x32xf32>
    %134 = arith.mulf %127, %127 : vector<16x32xf32>
    %cst_65 = arith.constant dense<0.000000e+00> : vector<16xf32>
    %135 = vector.multi_reduction <add>, %134, %cst_65 [1] : vector<16x32xf32> to vector<16xf32>
    %136 = vector.shape_cast %135 : vector<16xf32> to vector<16x1xf32>
    %cst_66 = arith.constant 3.200000e+01 : f32
    %137 = vector.broadcast %cst_66 : f32 to vector<16x1xf32>
    %138 = arith.divf %136, %137 : vector<16x1xf32>
    %cst_67 = arith.constant 9.99999997E-7 : f32
    %139 = vector.broadcast %cst_67 : f32 to vector<16x1xf32>
    %140 = arith.addf %138, %139 : vector<16x1xf32>
    %141 = math.rsqrt %140 : vector<16x1xf32>
    %142 = vector.broadcast %141 : vector<16x1xf32> to vector<16x32xf32>
    %143 = arith.mulf %127, %142 : vector<16x32xf32>
    %144 = vector.broadcast %133 : vector<1x32xf32> to vector<16x32xf32>
    %145 = arith.mulf %144, %143 : vector<16x32xf32>
    %c1_68 = arith.constant 1 : index
    %c0_69 = arith.constant 0 : index
    %c0_70 = arith.constant 0 : index
    %146 = vector.load %arg7[%c1_68, %c0_69, %c0_70] : memref<2x32x64xbf16, #tpu.memory_space<vmem>>, vector<1x32x64xbf16>
    %147 = vector.shape_cast %146 : vector<1x32x64xbf16> to vector<32x64xbf16>
    %148 = arith.truncf %145 : vector<16x32xf32> to vector<16x32xbf16>
    %cst_71 = arith.constant dense<0.000000e+00> : vector<16x64xf32>
    %149 = tpu.matmul %148, %147, %cst_71 {dimension_numbers = #tpu.dot_dimension_numbers<[1], [0], [0], [1], [0, 0, 1, 1], [], []>} : vector<16x32xbf16>, vector<32x64xbf16>, vector<16x64xf32> -> vector<16x64xf32>
    %150 = arith.mulf %149, %129 : vector<16x64xf32>
    %151 = arith.truncf %149 : vector<16x64xf32> to vector<16x64xbf16>
    %cst_72 = arith.constant dense<0.000000e+00> : vector<16x64xf32>
    %152 = tpu.matmul %151, %4, %cst_72 {dimension_numbers = #tpu.dot_dimension_numbers<[1], [0], [0], [1], [0, 0, 1, 1], [], []>} : vector<16x64xbf16>, vector<64x64xbf16>, vector<16x64xf32> -> vector<16x64xf32>
    %153 = arith.mulf %152, %131 : vector<16x64xf32>
    %154 = arith.addf %150, %153 : vector<16x64xf32>
    %155 = vector.extract_strided_slice %154 {offsets = [0, 0], sizes = [16, 16], strides = [1, 1]} : vector<16x64xf32> to vector<16x16xf32>
    %156 = vector.extract_strided_slice %154 {offsets = [0, 32], sizes = [16, 8], strides = [1, 1]} : vector<16x64xf32> to vector<16x8xf32>
    %157 = vector.extract_strided_slice %154 {offsets = [0, 48], sizes = [16, 8], strides = [1, 1]} : vector<16x64xf32> to vector<16x8xf32>
    %158 = vector.extract_strided_slice %155 {offsets = [0, 0], sizes = [16, 8], strides = [1, 1]} : vector<16x16xf32> to vector<16x8xf32>
    %159 = vector.extract_strided_slice %155 {offsets = [0, 8], sizes = [16, 8], strides = [1, 1]} : vector<16x16xf32> to vector<16x8xf32>
    %160 = tpu.concatenate %158, %159 in 0 : vector<16x8xf32>, vector<16x8xf32> -> vector<32x8xf32>
    %161 = arith.truncf %160 : vector<32x8xf32> to vector<32x8xbf16>
    %162 = arith.truncf %156 : vector<16x8xf32> to vector<16x8xbf16>
    %cst_73 = arith.constant dense<0.000000e+00> : vector<32x16xf32>
    %163 = tpu.matmul %161, %162, %cst_73 {dimension_numbers = #tpu.dot_dimension_numbers<[1], [1], [0], [0], [0, 0, 1, 0], [], []>} : vector<32x8xbf16>, vector<16x8xbf16>, vector<32x16xf32> -> vector<32x16xf32>
    %cst_74 = arith.constant 0.353553385 : f32
    %164 = vector.broadcast %cst_74 : f32 to vector<32x16xf32>
    %165 = arith.mulf %163, %164 : vector<32x16xf32>
    %cst_75 = arith.constant -3.40282347E+38 : f32
    %166 = vector.broadcast %cst_75 : f32 to vector<32x16xf32>
    %167 = arith.select %3, %166, %165 : vector<32x16xi1>, vector<32x16xf32>
    %cst_76 = arith.constant dense<0xFF800000> : vector<32xf32>
    %168 = vector.multi_reduction <maximumf>, %167, %cst_76 [1] : vector<32x16xf32> to vector<32xf32>
    %169 = vector.shape_cast %168 : vector<32xf32> to vector<32x1xf32>
    %170 = vector.broadcast %169 : vector<32x1xf32> to vector<32x16xf32>
    %171 = arith.subf %167, %170 : vector<32x16xf32>
    %172 = math.exp %171 : vector<32x16xf32>
    %cst_77 = arith.constant dense<0.000000e+00> : vector<32xf32>
    %173 = vector.multi_reduction <add>, %172, %cst_77 [1] : vector<32x16xf32> to vector<32xf32>
    %174 = vector.shape_cast %173 : vector<32xf32> to vector<32x1xf32>
    %175 = arith.truncf %172 : vector<32x16xf32> to vector<32x16xbf16>
    %176 = arith.truncf %157 : vector<16x8xf32> to vector<16x8xbf16>
    %cst_78 = arith.constant dense<0.000000e+00> : vector<32x8xf32>
    %177 = tpu.matmul %175, %176, %cst_78 {dimension_numbers = #tpu.dot_dimension_numbers<[1], [0], [0], [1], [0, 0, 1, 1], [], []>} : vector<32x16xbf16>, vector<16x8xbf16>, vector<32x8xf32> -> vector<32x8xf32>
    %178 = tpu.reciprocal %174 {approx = true} : vector<32x1xf32> -> vector<32x1xf32>
    %179 = vector.broadcast %178 : vector<32x1xf32> to vector<32x8xf32>
    %180 = arith.mulf %177, %179 : vector<32x8xf32>
    %181 = vector.extract_strided_slice %180 {offsets = [0, 0], sizes = [16, 8], strides = [1, 1]} : vector<32x8xf32> to vector<16x8xf32>
    %182 = vector.extract_strided_slice %180 {offsets = [16, 0], sizes = [16, 8], strides = [1, 1]} : vector<32x8xf32> to vector<16x8xf32>
    %183 = vector.extract_strided_slice %154 {offsets = [0, 16], sizes = [16, 16], strides = [1, 1]} : vector<16x64xf32> to vector<16x16xf32>
    %184 = vector.extract_strided_slice %154 {offsets = [0, 40], sizes = [16, 8], strides = [1, 1]} : vector<16x64xf32> to vector<16x8xf32>
    %185 = vector.extract_strided_slice %154 {offsets = [0, 56], sizes = [16, 8], strides = [1, 1]} : vector<16x64xf32> to vector<16x8xf32>
    %186 = vector.extract_strided_slice %183 {offsets = [0, 0], sizes = [16, 8], strides = [1, 1]} : vector<16x16xf32> to vector<16x8xf32>
    %187 = vector.extract_strided_slice %183 {offsets = [0, 8], sizes = [16, 8], strides = [1, 1]} : vector<16x16xf32> to vector<16x8xf32>
    %188 = tpu.concatenate %186, %187 in 0 : vector<16x8xf32>, vector<16x8xf32> -> vector<32x8xf32>
    %189 = arith.truncf %188 : vector<32x8xf32> to vector<32x8xbf16>
    %190 = arith.truncf %184 : vector<16x8xf32> to vector<16x8xbf16>
    %cst_79 = arith.constant dense<0.000000e+00> : vector<32x16xf32>
    %191 = tpu.matmul %189, %190, %cst_79 {dimension_numbers = #tpu.dot_dimension_numbers<[1], [1], [0], [0], [0, 0, 1, 0], [], []>} : vector<32x8xbf16>, vector<16x8xbf16>, vector<32x16xf32> -> vector<32x16xf32>
    %cst_80 = arith.constant 0.353553385 : f32
    %192 = vector.broadcast %cst_80 : f32 to vector<32x16xf32>
    %193 = arith.mulf %191, %192 : vector<32x16xf32>
    %cst_81 = arith.constant -3.40282347E+38 : f32
    %194 = vector.broadcast %cst_81 : f32 to vector<32x16xf32>
    %195 = arith.select %3, %194, %193 : vector<32x16xi1>, vector<32x16xf32>
    %cst_82 = arith.constant dense<0xFF800000> : vector<32xf32>
    %196 = vector.multi_reduction <maximumf>, %195, %cst_82 [1] : vector<32x16xf32> to vector<32xf32>
    %197 = vector.shape_cast %196 : vector<32xf32> to vector<32x1xf32>
    %198 = vector.broadcast %197 : vector<32x1xf32> to vector<32x16xf32>
    %199 = arith.subf %195, %198 : vector<32x16xf32>
    %200 = math.exp %199 : vector<32x16xf32>
    %cst_83 = arith.constant dense<0.000000e+00> : vector<32xf32>
    %201 = vector.multi_reduction <add>, %200, %cst_83 [1] : vector<32x16xf32> to vector<32xf32>
    %202 = vector.shape_cast %201 : vector<32xf32> to vector<32x1xf32>
    %203 = arith.truncf %200 : vector<32x16xf32> to vector<32x16xbf16>
    %204 = arith.truncf %185 : vector<16x8xf32> to vector<16x8xbf16>
    %cst_84 = arith.constant dense<0.000000e+00> : vector<32x8xf32>
    %205 = tpu.matmul %203, %204, %cst_84 {dimension_numbers = #tpu.dot_dimension_numbers<[1], [0], [0], [1], [0, 0, 1, 1], [], []>} : vector<32x16xbf16>, vector<16x8xbf16>, vector<32x8xf32> -> vector<32x8xf32>
    %206 = tpu.reciprocal %202 {approx = true} : vector<32x1xf32> -> vector<32x1xf32>
    %207 = vector.broadcast %206 : vector<32x1xf32> to vector<32x8xf32>
    %208 = arith.mulf %205, %207 : vector<32x8xf32>
    %209 = vector.extract_strided_slice %208 {offsets = [0, 0], sizes = [16, 8], strides = [1, 1]} : vector<32x8xf32> to vector<16x8xf32>
    %210 = vector.extract_strided_slice %208 {offsets = [16, 0], sizes = [16, 8], strides = [1, 1]} : vector<32x8xf32> to vector<16x8xf32>
    %211 = tpu.concatenate %181, %182, %209, %210 in 1 : vector<16x8xf32>, vector<16x8xf32>, vector<16x8xf32>, vector<16x8xf32> -> vector<16x32xf32>
    %c1_85 = arith.constant 1 : index
    %c0_86 = arith.constant 0 : index
    %c0_87 = arith.constant 0 : index
    %212 = vector.load %arg8[%c1_85, %c0_86, %c0_87] : memref<2x32x32xbf16, #tpu.memory_space<vmem>>, vector<1x32x32xbf16>
    %213 = vector.shape_cast %212 : vector<1x32x32xbf16> to vector<32x32xbf16>
    %214 = arith.truncf %211 : vector<16x32xf32> to vector<16x32xbf16>
    %cst_88 = arith.constant dense<0.000000e+00> : vector<16x32xf32>
    %215 = tpu.matmul %214, %213, %cst_88 {dimension_numbers = #tpu.dot_dimension_numbers<[1], [0], [0], [1], [0, 0, 1, 1], [], []>} : vector<16x32xbf16>, vector<32x32xbf16>, vector<16x32xf32> -> vector<16x32xf32>
    %216 = arith.addf %127, %215 : vector<16x32xf32>
    %c1_89 = arith.constant 1 : index
    %c0_90 = arith.constant 0 : index
    %c0_91 = arith.constant 0 : index
    %217 = vector.load %arg9[%c1_89, %c0_90, %c0_91] : memref<2x1x32xf32, #tpu.memory_space<vmem>>, vector<1x1x32xf32>
    %218 = vector.shape_cast %217 : vector<1x1x32xf32> to vector<1x32xf32>
    %219 = arith.mulf %216, %216 : vector<16x32xf32>
    %cst_92 = arith.constant dense<0.000000e+00> : vector<16xf32>
    %220 = vector.multi_reduction <add>, %219, %cst_92 [1] : vector<16x32xf32> to vector<16xf32>
    %221 = vector.shape_cast %220 : vector<16xf32> to vector<16x1xf32>
    %cst_93 = arith.constant 3.200000e+01 : f32
    %222 = vector.broadcast %cst_93 : f32 to vector<16x1xf32>
    %223 = arith.divf %221, %222 : vector<16x1xf32>
    %cst_94 = arith.constant 9.99999997E-7 : f32
    %224 = vector.broadcast %cst_94 : f32 to vector<16x1xf32>
    %225 = arith.addf %223, %224 : vector<16x1xf32>
    %226 = math.rsqrt %225 : vector<16x1xf32>
    %227 = vector.broadcast %226 : vector<16x1xf32> to vector<16x32xf32>
    %228 = arith.mulf %216, %227 : vector<16x32xf32>
    %229 = vector.broadcast %218 : vector<1x32xf32> to vector<16x32xf32>
    %230 = arith.mulf %229, %228 : vector<16x32xf32>
    %c1_95 = arith.constant 1 : index
    %c0_96 = arith.constant 0 : index
    %c0_97 = arith.constant 0 : index
    %231 = vector.load %arg10[%c1_95, %c0_96, %c0_97] : memref<2x32x64xbf16, #tpu.memory_space<vmem>>, vector<1x32x64xbf16>
    %232 = vector.shape_cast %231 : vector<1x32x64xbf16> to vector<32x64xbf16>
    %233 = arith.truncf %230 : vector<16x32xf32> to vector<16x32xbf16>
    %cst_98 = arith.constant dense<0.000000e+00> : vector<16x64xf32>
    %234 = tpu.matmul %233, %232, %cst_98 {dimension_numbers = #tpu.dot_dimension_numbers<[1], [0], [0], [1], [0, 0, 1, 1], [], []>} : vector<16x32xbf16>, vector<32x64xbf16>, vector<16x64xf32> -> vector<16x64xf32>
    %c1_99 = arith.constant 1 : index
    %c0_100 = arith.constant 0 : index
    %c0_101 = arith.constant 0 : index
    %235 = vector.load %arg11[%c1_99, %c0_100, %c0_101] : memref<2x32x64xbf16, #tpu.memory_space<vmem>>, vector<1x32x64xbf16>
    %236 = vector.shape_cast %235 : vector<1x32x64xbf16> to vector<32x64xbf16>
    %237 = arith.truncf %230 : vector<16x32xf32> to vector<16x32xbf16>
    %cst_102 = arith.constant dense<0.000000e+00> : vector<16x64xf32>
    %238 = tpu.matmul %237, %236, %cst_102 {dimension_numbers = #tpu.dot_dimension_numbers<[1], [0], [0], [1], [0, 0, 1, 1], [], []>} : vector<16x32xbf16>, vector<32x64xbf16>, vector<16x64xf32> -> vector<16x64xf32>
    %239 = arith.negf %234 : vector<16x64xf32>
    %240 = math.exp %239 : vector<16x64xf32>
    %cst_103 = arith.constant 1.000000e+00 : f32
    %241 = vector.broadcast %cst_103 : f32 to vector<16x64xf32>
    %242 = arith.addf %241, %240 : vector<16x64xf32>
    %243 = arith.divf %241, %242 : vector<16x64xf32>
    %244 = arith.mulf %234, %243 : vector<16x64xf32>
    %245 = arith.mulf %244, %238 : vector<16x64xf32>
    %c1_104 = arith.constant 1 : index
    %c0_105 = arith.constant 0 : index
    %c0_106 = arith.constant 0 : index
    %246 = vector.load %arg12[%c1_104, %c0_105, %c0_106] : memref<2x64x32xbf16, #tpu.memory_space<vmem>>, vector<1x64x32xbf16>
    %247 = vector.shape_cast %246 : vector<1x64x32xbf16> to vector<64x32xbf16>
    %248 = arith.truncf %245 : vector<16x64xf32> to vector<16x64xbf16>
    %cst_107 = arith.constant dense<0.000000e+00> : vector<16x32xf32>
    %249 = tpu.matmul %248, %247, %cst_107 {dimension_numbers = #tpu.dot_dimension_numbers<[1], [0], [0], [1], [0, 0, 1, 1], [], []>} : vector<16x64xbf16>, vector<64x32xbf16>, vector<16x32xf32> -> vector<16x32xf32>
    %250 = arith.addf %216, %249 : vector<16x32xf32>
    %c0_108 = arith.constant 0 : index
    %c0_109 = arith.constant 0 : index
    %251 = vector.load %arg13[%c0_108, %c0_109] : memref<1x32xf32, #tpu.memory_space<vmem>>, vector<1x32xf32>
    %252 = arith.mulf %250, %250 : vector<16x32xf32>
    %cst_110 = arith.constant dense<0.000000e+00> : vector<16xf32>
    %253 = vector.multi_reduction <add>, %252, %cst_110 [1] : vector<16x32xf32> to vector<16xf32>
    %254 = vector.shape_cast %253 : vector<16xf32> to vector<16x1xf32>
    %cst_111 = arith.constant 3.200000e+01 : f32
    %255 = vector.broadcast %cst_111 : f32 to vector<16x1xf32>
    %256 = arith.divf %254, %255 : vector<16x1xf32>
    %cst_112 = arith.constant 9.99999997E-7 : f32
    %257 = vector.broadcast %cst_112 : f32 to vector<16x1xf32>
    %258 = arith.addf %256, %257 : vector<16x1xf32>
    %259 = math.rsqrt %258 : vector<16x1xf32>
    %260 = vector.broadcast %259 : vector<16x1xf32> to vector<16x32xf32>
    %261 = arith.mulf %250, %260 : vector<16x32xf32>
    %262 = vector.broadcast %251 : vector<1x32xf32> to vector<16x32xf32>
    %263 = arith.mulf %262, %261 : vector<16x32xf32>
    %c0_113 = arith.constant 0 : index
    %c0_114 = arith.constant 0 : index
    %264 = vector.load %arg14[%c0_113, %c0_114] : memref<32x128xbf16, #tpu.memory_space<vmem>>, vector<32x128xbf16>
    %265 = arith.truncf %263 : vector<16x32xf32> to vector<16x32xbf16>
    %cst_115 = arith.constant dense<0.000000e+00> : vector<16x128xf32>
    %266 = tpu.matmul %265, %264, %cst_115 {dimension_numbers = #tpu.dot_dimension_numbers<[1], [0], [0], [1], [0, 0, 1, 1], [], []>} : vector<16x32xbf16>, vector<32x128xbf16>, vector<16x128xf32> -> vector<16x128xf32>
    %c0_116 = arith.constant 0 : index
    %c0_117 = arith.constant 0 : index
    %267 = vector.load %arg15[%c0_116, %c0_117] : memref<16x128xf32, #tpu.memory_space<vmem>>, vector<16x128xf32>
    tpu.vector_store %arg15[%c0_116, %c0_117], %266 {strides = array<i32>} : memref<16x128xf32, #tpu.memory_space<vmem>>, vector<16x128xf32>,
    return
  }
  func.func @transform_0(%arg0: i32) -> (i32, i32) {
    %c0_i32 = arith.constant 0 : i32
    %c0_i32_0 = arith.constant 0 : i32
    %c0_i32_1 = arith.constant 0 : i32
    return %c0_i32, %c0_i32_0 : i32, i32
  }
  func.func @transform_1(%arg0: i32) -> (i32, i32) {
    %c0_i32 = arith.constant 0 : i32
    %c0_i32_0 = arith.constant 0 : i32
    %c0_i32_1 = arith.constant 0 : i32
    return %c0_i32, %c0_i32_0 : i32, i32
  }
  func.func @transform_2(%arg0: i32) -> (i32, i32, i32) {
    %c0_i32 = arith.constant 0 : i32
    %c0_i32_0 = arith.constant 0 : i32
    %c0_i32_1 = arith.constant 0 : i32
    %c0_i32_2 = arith.constant 0 : i32
    return %c0_i32, %c0_i32_0, %c0_i32_1 : i32, i32, i32
  }
  func.func @transform_3(%arg0: i32) -> (i32, i32, i32) {
    %c0_i32 = arith.constant 0 : i32
    %c0_i32_0 = arith.constant 0 : i32
    %c0_i32_1 = arith.constant 0 : i32
    %c0_i32_2 = arith.constant 0 : i32
    return %c0_i32, %c0_i32_0, %c0_i32_1 : i32, i32, i32
  }
  func.func @transform_4(%arg0: i32) -> (i32, i32) {
    %c0_i32 = arith.constant 0 : i32
    %c0_i32_0 = arith.constant 0 : i32
    %c0_i32_1 = arith.constant 0 : i32
    return %c0_i32, %c0_i32_0 : i32, i32
  }
  func.func @transform_5(%arg0: i32) -> (i32, i32, i32) {
    %c0_i32 = arith.constant 0 : i32
    %c0_i32_0 = arith.constant 0 : i32
    %c0_i32_1 = arith.constant 0 : i32
    %c0_i32_2 = arith.constant 0 : i32
    return %c0_i32, %c0_i32_0, %c0_i32_1 : i32, i32, i32
  }
  func.func @transform_6(%arg0: i32) -> (i32, i32, i32) {
    %c0_i32 = arith.constant 0 : i32
    %c0_i32_0 = arith.constant 0 : i32
    %c0_i32_1 = arith.constant 0 : i32
    %c0_i32_2 = arith.constant 0 : i32
    return %c0_i32, %c0_i32_0, %c0_i32_1 : i32, i32, i32
  }
  func.func @transform_7(%arg0: i32) -> (i32, i32, i32) {
    %c0_i32 = arith.constant 0 : i32
    %c0_i32_0 = arith.constant 0 : i32
    %c0_i32_1 = arith.constant 0 : i32
    %c0_i32_2 = arith.constant 0 : i32
    return %c0_i32, %c0_i32_0, %c0_i32_1 : i32, i32, i32
  }
  func.func @transform_8(%arg0: i32) -> (i32, i32, i32) {
    %c0_i32 = arith.constant 0 : i32
    %c0_i32_0 = arith.constant 0 : i32
    %c0_i32_1 = arith.constant 0 : i32
    %c0_i32_2 = arith.constant 0 : i32
    return %c0_i32, %c0_i32_0, %c0_i32_1 : i32, i32, i32
  }
  func.func @transform_9(%arg0: i32) -> (i32, i32, i32) {
    %c0_i32 = arith.constant 0 : i32
    %c0_i32_0 = arith.constant 0 : i32
    %c0_i32_1 = arith.constant 0 : i32
    %c0_i32_2 = arith.constant 0 : i32
    return %c0_i32, %c0_i32_0, %c0_i32_1 : i32, i32, i32
  }
  func.func @transform_10(%arg0: i32) -> (i32, i32, i32) {
    %c0_i32 = arith.constant 0 : i32
    %c0_i32_0 = arith.constant 0 : i32
    %c0_i32_1 = arith.constant 0 : i32
    %c0_i32_2 = arith.constant 0 : i32
    return %c0_i32, %c0_i32_0, %c0_i32_1 : i32, i32, i32
  }
  func.func @transform_11(%arg0: i32) -> (i32, i32, i32) {
    %c0_i32 = arith.constant 0 : i32
    %c0_i32_0 = arith.constant 0 : i32
    %c0_i32_1 = arith.constant 0 : i32
    %c0_i32_2 = arith.constant 0 : i32
    return %c0_i32, %c0_i32_0, %c0_i32_1 : i32, i32, i32
  }
  func.func @transform_12(%arg0: i32) -> (i32, i32) {
    %c0_i32 = arith.constant 0 : i32
    %c0_i32_0 = arith.constant 0 : i32
    %c0_i32_1 = arith.constant 0 : i32
    return %c0_i32, %c0_i32_0 : i32, i32
  }
  func.func @transform_13(%arg0: i32) -> (i32, i32) {
    %c0_i32 = arith.constant 0 : i32
    %c0_i32_0 = arith.constant 0 : i32
    %c0_i32_1 = arith.constant 0 : i32
    return %c0_i32, %c0_i32_0 : i32, i32
  }
  func.func @transform_14(%arg0: i32) -> (i32, i32) {
    %c0_i32 = arith.constant 0 : i32
    %c0_i32_0 = arith.constant 0 : i32
    %c0_i32_1 = arith.constant 0 : i32
    return %c0_i32, %c0_i32_0 : i32, i32
  }
}

</mosaic_0001>

<bundles_post_ra>
// kernel: tpu_custom_call.1
= control target key start
LH: loop header
LB: loop body
LE: loop exit
PB: predicated region body
PF: predicated region fallthrough
CT: control target
= control target key end

     0   :  { %19 = vsyncpa [#allocation3], 0  ;;  %s3183_s0 = inlined_call_operand.hbm [shape: f32[16,32], index: 0, kind: input, shape index: {}]   ;;  %s3184_s1 = inlined_call_operand.vmem [shape: f32[32,16], index: 1, kind: input, shape index: {}]   ;;  %s3185_s2 = inlined_call_operand.vmem [shape: f32[2,16,64], index: 2, kind: input, shape index: {}]   ;;  %s3186_s3 = inlined_call_operand.vmem [shape: f32[2,16,64], index: 3, kind: input, shape index: {}]   ;;  %s3187_s4 = inlined_call_operand.vmem [shape: bf16[64,64], index: 4, kind: input, shape index: {}]   ;;  %s3188_s5 = inlined_call_operand.vmem [shape: f32[2,1,32], index: 5, kind: input, shape index: {}]   ;;  %s3189_s6 = inlined_call_operand.vmem [shape: bf16[2,32,64], index: 6, kind: input, shape index: {}]   ;;  %s3190_s7 = inlined_call_operand.hbm [shape: bf16[2,32,32], index: 7, kind: input, shape index: {}]   ;;  %s3191_s8 = inlined_call_operand.hbm [shape: f32[2,1,32], index: 8, kind: input, shape index: {}]   ;;  %s3192_s9 = inlined_call_operand.hbm [shape: bf16[2,32,64], index: 9, kind: input, shape index: {}]   ;;  %s3193_s10 = inlined_call_operand.hbm [shape: bf16[2,32,64], index: 10, kind: input, shape index: {}]   ;;  %s3194_s11 = inlined_call_operand.vmem [shape: bf16[2,64,32], index: 11, kind: input, shape index: {}]   ;;  %s3195_s12 = inlined_call_operand.vmem [shape: f32[1,32], index: 12, kind: input, shape index: {}]   ;;  %s3196_s13 = inlined_call_operand.vmem [shape: bf16[32,128], index: 13, kind: input, shape index: {}]   ;;  %s3197_s14 = inlined_call_operand.hbm [shape: f32[16,128], index: 14, kind: output, shape index: {}]  }
   0x1   :  { %20 = vsyncpa [#allocation6], 0 }
   0x2   :  { %21 = vsyncpa [#allocation9], 0 }
   0x3   :  { %22 = vsyncpa [#allocation4], 0  ;;  %s2604_s29 = smov [#allocation5]   ;;  %s2464_s17 = scalar_lea.hbm %s3190_s7, 512 }
   0x4   :  { %s52_s30 = sshll.u32 %s2604_s29, 4  ;;  %p2465_p0 = scmp.ne.s32.totalorder %s3190_s7, %s2464_s17  ;;  %s53_s30 = int_to_ptr.vmem [resolvable:$true] %s52_s30 }
   0x5   :  { %p2468_p1 = scmp.lt.u32.totalorder %s2464_s17, %s3190_s7 }
   0x7   :  { %p2470_p2 = pnand %p2468_p1, %p2465_p0 }
   0x9   :  { %2473 = shalt.err (!%p2470_p2)
}
   0xa   :  { %s2474_s22 = scalar_lea.vmem %s53_s30, 512  ;;  %p2479_p4 = scmp.lt.s32.totalorder %s53_s30, %s53_s30 }
   0xb   :  { %p2475_p3 = scmp.ne.s32.totalorder %s53_s30, %s2474_s22  ;;  %p2480_p5 = scmp.lt.s32.totalorder %s2474_s22, %s2474_s22 }
   0xd   :  { %p2481_p6 = por %p2480_p5, %p2479_p4 }
   0xf   :  { %p2482_p7 = pnand %p2481_p6, %p2475_p3 }
  0x11   :  { %2485 = shalt.err (!%p2482_p7)
}
  0x12   :  { %s2605_s23 = smov 64   ;;  %s2606_s24 = smov 4  }
  0x13   :  { %58 = dma.hbm_to_vmem [thread:$0]  %s3190_s7, 512, %s53_s30, [#allocation6], %s2605_s23, %s2605_s23, %s2606_s24  }
  0x14   :  { %s2607_s27 = smov [#allocation8]   ;;  %s2608_s29 = smov [#allocation2]  }
  0x15   :  { %s76_s28 = sshll.u32 %s2607_s27, 4  ;;  %s28_s15 = sshll.u32 %s2608_s29, 4  ;;  %s77_s28 = int_to_ptr.vmem [resolvable:$true] %s76_s28  ;;  %s29_s15 = int_to_ptr.vmem [resolvable:$true] %s28_s15 }
  0x16   :  { %s2486_s18 = scalar_lea.hbm %s3192_s9, 512 }
  0x17   :  { %p2487_p8 = scmp.ne.s32.totalorder %s3192_s9, %s2486_s18  ;;  %p2490_p9 = scmp.lt.u32.totalorder %s2486_s18, %s3192_s9 }
  0x19   :  { %p2492_p10 = pnand %p2490_p9, %p2487_p8 }
  0x1b   :  { %2495 = shalt.err (!%p2492_p10)
}
  0x1c   :  { %s2496_s7 = scalar_lea.vmem %s77_s28, 512  ;;  %p2501_p12 = scmp.lt.s32.totalorder %s77_s28, %s77_s28 }
  0x1d   :  { %p2497_p11 = scmp.ne.s32.totalorder %s77_s28, %s2496_s7  ;;  %p2502_p13 = scmp.lt.s32.totalorder %s2496_s7, %s2496_s7 }
  0x1f   :  { %p2503_p0 = por %p2502_p13, %p2501_p12 }
  0x21   :  { %p2504_p1 = pnand %p2503_p0, %p2497_p11 }
  0x23   :  { %2507 = shalt.err (!%p2504_p1)
}
  0x24   :  { %82 = dma.hbm_to_vmem [thread:$0]  %s3192_s9, 512, %s77_s28, [#allocation9], %s2605_s23, %s2605_s23, %s2606_s24  }
  0x25   :  { %s2508_s29 = scalar_lea.hbm %s3183_s0, 256 }
  0x26   :  { %p2509_p2 = scmp.ne.s32.totalorder %s3183_s0, %s2508_s29  ;;  %p2512_p3 = scmp.lt.u32.totalorder %s2508_s29, %s3183_s0 }
  0x28   :  { %p2514_p4 = pnand %p2512_p3, %p2509_p2 }
  0x2a   :  { %2517 = shalt.err (!%p2514_p4)
}
  0x2b   :  { %s2518_s20 = scalar_lea.vmem %s29_s15, 256  ;;  %p2523_p6 = scmp.lt.s32.totalorder %s29_s15, %s29_s15 }
  0x2c   :  { %p2519_p5 = scmp.ne.s32.totalorder %s29_s15, %s2518_s20  ;;  %p2524_p7 = scmp.lt.s32.totalorder %s2518_s20, %s2518_s20 }
  0x2e   :  { %p2525_p8 = por %p2524_p7, %p2523_p6 }
  0x30   :  { %p2526_p9 = pnand %p2525_p8, %p2519_p5 }
  0x32   :  { %2529 = shalt.err (!%p2526_p9)
}
  0x33   :  { %s2609_s9 = smov 128   ;;  %s2610_s28 = smov 8  }
  0x34   :  { %34 = dma.hbm_to_vmem [thread:$0]  %s3183_s0, 256, %s29_s15, [#allocation3], %s2609_s9, %s2609_s9, %s2610_s28  }
  0x35   :  { %s2611_s7 = smov [#allocation7]   ;;  %s2530_s27 = scalar_lea.hbm %s3191_s8, 32 }
  0x36   :  { %s64_s30 = sshll.u32 %s2611_s7, 4  ;;  %p2531_p10 = scmp.ne.s32.totalorder %s3191_s8, %s2530_s27  ;;  %s65_s30 = int_to_ptr.vmem [resolvable:$true] %s64_s30 }
  0x37   :  { %p2534_p11 = scmp.lt.u32.totalorder %s2530_s27, %s3191_s8 }
  0x39   :  { %p2536_p12 = pnand %p2534_p11, %p2531_p10 }
  0x3b   :  { %2539 = shalt.err (!%p2536_p12)
}
  0x3c   :  { %s2540_s19 = scalar_lea.vmem %s65_s30, 32  ;;  %p2545_p0 = scmp.lt.s32.totalorder %s65_s30, %s65_s30 }
  0x3d   :  { %p2541_p13 = scmp.ne.s32.totalorder %s65_s30, %s2540_s19  ;;  %p2546_p1 = scmp.lt.s32.totalorder %s2540_s19, %s2540_s19 }
  0x3f   :  { %p2547_p2 = por %p2546_p1, %p2545_p0 }
  0x41   :  { %p2548_p3 = pnand %p2547_p2, %p2541_p13 }
  0x43   :  { %2551 = shalt.err (!%p2548_p3)
}
  0x44   :  { %s2612_s0 = smov 16   ;;  %s2613_s15 = smov 1  }
  0x45   :  { %70 = dma.hbm_to_vmem [thread:$0]  %s3191_s8, 32, %s65_s30, [#allocation6], %s2612_s0, %s2612_s0, %s2613_s15  }
  0x46   :  { %s2614_s22 = smov [#allocation10]   ;;  %s2552_s27 = scalar_lea.hbm %s3193_s10, 512 }
  0x47   :  { %s88_s7 = sshll.u32 %s2614_s22, 4  ;;  %p2553_p4 = scmp.ne.s32.totalorder %s3193_s10, %s2552_s27  ;;  %s89_s7 = int_to_ptr.vmem [resolvable:$true] %s88_s7 }
  0x48   :  { %p2556_p5 = scmp.lt.u32.totalorder %s2552_s27, %s3193_s10 }
  0x4a   :  { %p2558_p6 = pnand %p2556_p5, %p2553_p4 }
  0x4c   :  { %2561 = shalt.err (!%p2558_p6)
}
  0x4d   :  { %s2562_s19 = scalar_lea.vmem %s89_s7, 512  ;;  %p2567_p8 = scmp.lt.s32.totalorder %s89_s7, %s89_s7 }
  0x4e   :  { %p2563_p7 = scmp.ne.s32.totalorder %s89_s7, %s2562_s19  ;;  %p2568_p9 = scmp.lt.s32.totalorder %s2562_s19, %s2562_s19 }
  0x50   :  { %p2569_p10 = por %p2568_p9, %p2567_p8 }
  0x52   :  { %p2570_p11 = pnand %p2569_p10, %p2563_p7 }
  0x54   :  { %2573 = shalt.err (!%p2570_p11)
}
  0x55   :  { %94 = dma.hbm_to_vmem [thread:$0]  %s3193_s10, 512, %s89_s7, [#allocation9], %s2605_s23, %s2605_s23, %s2606_s24  }
  0x56   :  { %2596 = dma.done.wait [#allocation3], 256  }
  0x57   :  { %2597 = vsyncadd [#allocation3], 4294967040 }
  0x58   :  { %2598 = dma.done.wait [#allocation6], 544  }
  0x59   :  { %2599 = vsyncadd [#allocation6], 4294966752 }
  0x5a   :  { %2600 = dma.done.wait [#allocation9], 1024  }
  0x5b   :  { %2601 = vsyncadd [#allocation9], 4294966272  ;;  %v2774_v0 = vld [vmem:[#allocation2] sm:$0xff]  ;;  %vm142_vm0 = vcmask 261120   ;;  %v2776_v1 = vld [vmem:[#allocation2 + $0x8] sm:$0xff]  ;;  %v2615_v7 = vmov 0.0  }
  0x5c   :  { %v140_v2 = vmul.f32 %v2774_v0, %v2774_v0  ;;  %v141_v3 = vmul.f32 %v2776_v1, %v2776_v1  ;;  %v2334_v6 = vld [vmem:[%s3189_s6] sm:$0xff]   ;;  %2101 = vmatprep.subr.bf16.mxu0 %v2615_v7  ;;  %vm2616_vm1 = vmmov 0   ;;  %v2335_v8 = vld [vmem:[%s3189_s6 + $0x8] sm:$0xff]   ;;  %2109 = vmatprep.subr.bf16.mxu1 %v2615_v7  ;;  %v2813_v11 = vld [vmem:[%s3187_s4 + $0x10] sm:$0xff]   ;;  %vm254_vm2 = vcmask 523264   ;;  %s2617_s15 = smov 120  }
  0x5d   :  { %2105 = vmatprep.mubr.msk.bf16.mxu0 %vm2616_vm1, %v2615_v7  ;;  %2102 = vmatpush3.bf16.msra.mxu0 %v2334_v6  ;;  %v2800_v9 = vld [vmem:[%s3187_s4] sm:$0xff]   ;;  %v2806_v10 = vld [vmem:[%s3187_s4 + $0x8] sm:$0xff]   ;;  %v2827_v26 = vld [vmem:[%s3187_s4 + $0x18] sm:$0xff]   ;;  %vm316_vm3 = vcmask 64512   ;;  %s2618_s20 = smov 88   ;;  %s2619_s21 = smov 96  }
  0x5e   :  { %v143_v4 = vsel %vm142_vm0, %v140_v2, 0.0  ;;  %v146_v5 = vsel %vm142_vm0, %v141_v3, 0.0  ;;  %2103 = vmatprep.subr.bf16.mxu0 %v2615_v7  ;;  %2117 = vmatprep.mubr.msk.bf16.mxu1 %vm2616_vm1, %v2615_v7  ;;  %v1945_v21 = vld [vmem:[%s3188_s5] ss:$0 sm:$0xff]  ;;  %v136_v34 = vld [vmem:[%s3185_s2 + $0x8] sm:$0xff]  ;;  %s2620_s22 = smov 112  }
  0x5f   :  { %144 = vadd.xlane.f32.xlu0 %v143_v4  ;;  %2110 = vmatpush3.bf16.msra.mxu1 %v2800_v9  ;;  %v135_v32 = vld [vmem:[%s3185_s2] sm:$0xff]  ;;  %v138_v36 = vld [vmem:[%s3186_s3 + $0x8] sm:$0xff]  ;;  %v2868_v58 = vld [vmem:[%s3184_s1 + $0x10] sm:$0xff]  ;;  %vm383_vm5 = vcmask 130048   ;;  %s2622_s19 = smov 72   ;;  %s2623_s8 = smov 24  }
  0x60   :  { %2111 = vmatprep.subr.bf16.mxu1 %v2615_v7  ;;  %v137_v33 = vld [vmem:[%s3186_s3] sm:$0xff]  ;;  %vm125_vm4 = vcmp.gt.f32.partialorder %v2868_v58, 0.5  ;;  %v2879_v61 = vld [vmem:[%s3184_s1 + $0x8] sm:$0xff]  ;;  %v2888_v6 = vld [vmem:[%s3184_s1 + $0x18] sm:$0xff]  ;;  %vm693_vm9 = vcmask 195584  }
  0x61   :  { %2104 = vmatpush3.bf16.msra.mxu0 %v2335_v8  ;;  %v2873_v59 = vld [vmem:[%s3184_s1] sm:$0xff]  ;;  %vm124_vm7 = vcmp.gt.f32.partialorder %v2879_v61, 0.5  ;;  %vm126_vm8 = vcmp.gt.f32.partialorder %v2888_v6, 0.5  ;;  %s2621_s1 = smov 80  }
  0x62   :  { %vm123_vm6 = vcmp.gt.f32.partialorder %v2873_v59, 0.5 }
  0x63   :  { %147 = vadd.xlane.f32.xlu0 %v146_v5  ;;  %2112 = vmatpush3.bf16.msra.mxu1 %v2806_v10 }
  0x64   :  { %2113 = vmatprep.subr.bf16.mxu1 %v2615_v7 }
  0x67   :  { %2114 = vmatpush3.bf16.msra.mxu1 %v2813_v11 }
  0x68   :  { %2115 = vmatprep.subr.bf16.mxu1 %v2615_v7 }
  0x6b   :  { %2116 = vmatpush3.bf16.msra.mxu1 %v2827_v26 }
  0xec   :  { %v145_v12 = vpop.xlane.xlu0 %144 }
  0xed   :  { %v150_v13 = vmul.f32 0.03125, %v145_v12 }
  0xef   :  { %v152_v14 = vadd.f32 1e-06, %v150_v13 }
  0xf0   :  { %v148_v15 = vpop.xlane.xlu0 %147 }
  0xf1   :  { %2364 = vrsqrt.f32 %v152_v14  ;;  %v151_v16 = vmul.f32 0.03125, %v148_v15 }
  0xf3   :  { %v153_v17 = vadd.f32 1e-06, %v151_v16 }
  0xf5   :  { %2366 = vrsqrt.f32 %v153_v17 }
  0xfb   :  { %v2365_v18 = vpop.eup %2364 }
  0xfc   :  { %v156_v19 = vmul.f32 %v2365_v18, %v2774_v0 }
  0xfe   :  { %v164_v23 = vmul.f32 %v1945_v21, %v156_v19 }
  0xff   :  { %v2367_v20 = vpop.eup %2366 }
 0x100   :  { %v157_v22 = vmul.f32 %v2367_v20, %v2776_v1 }
 0x102   :  { %v165_v24 = vmul.f32 %v1945_v21, %v157_v22 }
 0x104   :  { %v170_v25 = vpack.c.bf16 %v165_v24, %v164_v23 }
 0x106   :  { %2106 = vmatmul.mubr.msk.bf16.vlgmr.msra.gmra.mrb[0].mxu0 %vm142_vm0, %v170_v25 }
 0x1d9   :  { %v220_v27 = vpop.f32.mrb[0].mxu0 }
 0x1da   :  { %v2107_v28 = vpop.f32.mrb[1].mxu0  ;;  %v227_v37 = vmul.f32 %v220_v27, %v135_v32 }
 0x1db   :  { %v223_v29 = vpop.f32.mrb[2].mxu0 }
 0x1dc   :  { %v229_v30 = vpack.c.bf16 %v223_v29, %v220_v27  ;;  %v2108_v31 = vpop.f32.mrb[3].mxu0  ;;  %v228_v41 = vmul.f32 %v223_v29, %v136_v34 }
 0x1de   :  { %2118 = vmatmul.mubr.msk.bf16.vlgmr.msra.gmra.mrb[0].mxu1 %vm254_vm2, %v229_v30 }
 0x2b1   :  { %v292_v35 = vpop.f32.mrb[0].mxu1 }
 0x2b2   :  { %v299_v38 = vmul.f32 %v292_v35, %v137_v33  ;;  %v2119_v39 = vpop.f32.mrb[1].mxu1 }
 0x2b3   :  { %v295_v40 = vpop.f32.mrb[2].mxu1 }
 0x2b4   :  { %v301_v42 = vadd.f32 %v299_v38, %v227_v37  ;;  %v300_v43 = vmul.f32 %v295_v40, %v138_v36  ;;  %v2120_v44 = vpop.f32.mrb[3].mxu1 }
 0x2b6   :  { %v302_v45 = vadd.f32 %v300_v43, %v228_v41 }
 0x2b8   :  { %v2843_v46 = vpack.c.bf16 %v302_v45, %v301_v42  ;;  %v2294_v47 = vpack.i.bf16 %v302_v45, %v301_v42 }
 0x2ba   :  { %2295 = vrot.lane.b32.xlu1 %v2294_v47, %s2617_s15  ;;  %493 = vrot.lane.b32.xlu0 %v2843_v46, %s2618_s20 }
 0x2bb   :  { %2123 = vmatprep.mubr.msk.bf16.mxu0 %vm316_vm3, %v2843_v46 }
 0x2be   :  { %314 = vrot.lane.b32.xlu1 %v2843_v46, %s2619_s21 }
 0x2c2   :  { %489 = vrot.lane.b32.xlu1 %v2843_v46, %s2620_s22 }
 0x32c   :  { %v2296_v48 = vpop.permute.xlu1 %2295  ;;  %v494_v49 = vpop.permute.xlu0 %493 }
 0x32d   :  { %v2298_v50 = vunpack.i.h.bf16 %v2296_v48  ;;  %v2297_v51 = vunpack.i.l.bf16 %v2296_v48  ;;  %v502_v52 = vsel %vm316_vm3, %v494_v49, 0  ;;  %2270 = vmatprep.subr.msk.bf16.mxu1 %vm316_vm3, %v494_v49 }
 0x32e   :  { %2134 = vmatpush3.bf16.xpose.msra.mxu1 %v502_v52 }
 0x32f   :  { %v312_v53 = vpack.c.bf16 %v2298_v50, %v2297_v51  ;;  %2145 = vmatprep.subr.bf16.mxu1 %v2615_v7 }
 0x330   :  { %v315_v54 = vpop.permute.xlu1 %314 }
 0x331   :  { %v324_v55 = vsel %vm316_vm3, %v315_v54, 0  ;;  %491 = vrot.lane.b32.xlu1 %v312_v53, %s2620_s22  ;;  %2269 = vmatprep.subr.msk.bf16.mxu0 %vm316_vm3, %v315_v54 }
 0x332   :  { %2122 = vmatpush3.bf16.xpose.msra.mxu0 %v324_v55 }
 0x334   :  { %v490_v56 = vpop.permute.xlu1 %489 }
 0x335   :  { %2135 = vmatprep.mubr.msk.bf16.mxu1 %vm316_vm3, %v490_v56 }
 0x339   :  { %2124 = vmatmul.mubr.msk.bf16.vlgmr.msra.gmra.mrb[4].mxu0 %vm316_vm3, %v312_v53 }
 0x3a3   :  { %v492_v57 = vpop.permute.xlu1 %491 }
 0x3a4   :  { %2136 = vmatmul.mubr.msk.bf16.vlgmr.msra.gmra.mrb[4].mxu1 %vm316_vm3, %v492_v57 }
 0x3a5   :  { %2149 = vmatprep.mubr.msk.bf16.mxu1 %vm2616_vm1, %v2615_v7 }
 0x40c   :  { %v2125_v60 = vpop.f32.mrb[4].mxu0 }
 0x40d   :  { %v377_v62 = vmul.f32 0.35355338, %v2125_v60  ;;  %v360_v63 = vpop.f32.mrb[5].mxu0 }
 0x40e   :  { %v375_v2 = vmul.f32 0.35355338, %v360_v63  ;;  %v2126_v3 = vpop.f32.mrb[6].mxu0 }
 0x40f   :  { %v363_v4 = vpop.f32.mrb[7].mxu0  ;;  %v381_v5 = vsel %vm125_vm4, -3.4028235e+38, %v377_v62  ;;  %v378_v13 = vmul.f32 0.35355338, %v2126_v3 }
 0x410   :  { %v376_v8 = vmul.f32 0.35355338, %v363_v4  ;;  %v390_v12 = vsel %vm383_vm5, %v381_v5, -inf  ;;  %v379_v14 = vsel %vm123_vm6, -3.4028235e+38, %v375_v2 }
 0x411   :  { %391 = vmax.xlane.f32.xlu1 %v390_v12  ;;  %v384_v17 = vsel %vm383_vm5, %v379_v14, -inf  ;;  %v382_v18 = vsel %vm126_vm8, -3.4028235e+38, %v378_v13 }
 0x412   :  { %v380_v15 = vsel %vm124_vm7, -3.4028235e+38, %v376_v8  ;;  %v393_v19 = vsel %vm383_vm5, %v382_v18, -inf }
 0x413   :  { %v387_v16 = vsel %vm383_vm5, %v380_v15, -inf }
 0x414   :  { %388 = vmax.xlane.f32.xlu0 %v387_v16 }
 0x415   :  { %385 = vmax.xlane.f32.xlu1 %v384_v17 }
 0x419   :  { %394 = vmax.xlane.f32.xlu1 %v393_v19 }
 0x477   :  { %v2137_v20 = vpop.f32.mrb[4].mxu1 }
 0x478   :  { %v555_v21 = vmul.f32 0.35355338, %v2137_v20  ;;  %v538_v22 = vpop.f32.mrb[5].mxu1 }
 0x479   :  { %v553_v23 = vmul.f32 0.35355338, %v538_v22  ;;  %v2138_v24 = vpop.f32.mrb[6].mxu1 }
 0x47a   :  { %v556_v25 = vmul.f32 0.35355338, %v2138_v24  ;;  %v541_v27 = vpop.f32.mrb[7].mxu1  ;;  %v559_v28 = vsel %vm125_vm4, -3.4028235e+38, %v555_v21 }
 0x47b   :  { %v554_v29 = vmul.f32 0.35355338, %v541_v27  ;;  %v567_v30 = vsel %vm383_vm5, %v559_v28, -inf  ;;  %v557_v32 = vsel %vm123_vm6, -3.4028235e+38, %v553_v23 }
 0x47c   :  { %568 = vmax.xlane.f32.xlu1 %v567_v30  ;;  %v560_v31 = vsel %vm126_vm8, -3.4028235e+38, %v556_v25  ;;  %v561_v35 = vsel %vm383_vm5, %v557_v32, -inf }
 0x47d   :  { %v570_v33 = vsel %vm383_vm5, %v560_v31, -inf  ;;  %v558_v34 = vsel %vm124_vm7, -3.4028235e+38, %v554_v29 }
 0x47e   :  { %571 = vmax.xlane.f32.xlu0 %v570_v33  ;;  %v564_v36 = vsel %vm383_vm5, %v558_v34, -inf }
 0x480   :  { %562 = vmax.xlane.f32.xlu1 %v561_v35 }
 0x482   :  { %565 = vmax.xlane.f32.xlu0 %v564_v36 }
 0x491   :  { %422 = vrot.lane.b32.xlu1 %v2843_v46, %s2621_s1 }
 0x498   :  { %599 = vrot.lane.b32.xlu0 %v2843_v46, %s2622_s19 }
 0x49e   :  { %v392_v37 = vpop.xlane.xlu1 %391 }
 0x49f   :  { %v398_v38 = vsub.f32 %v381_v5, %v392_v37 }
 0x4a1   :  { %v404_v39 = vmul.f32 1.442695, %v398_v38  ;;  %v389_v40 = vpop.xlane.xlu0 %388 }
 0x4a2   :  { %v397_v41 = vsub.f32 %v380_v15, %v389_v40  ;;  %v386_v42 = vpop.xlane.xlu1 %385 }
 0x4a3   :  { %v396_v43 = vsub.f32 %v379_v14, %v386_v42  ;;  %2368 = vpow2.f32 %v404_v39 }
 0x4a4   :  { %v402_v44 = vmul.f32 1.442695, %v397_v41 }
 0x4a5   :  { %v400_v45 = vmul.f32 1.442695, %v396_v43 }
 0x4a6   :  { %2370 = vpow2.f32 %v402_v44  ;;  %v395_v47 = vpop.xlane.xlu1 %394 }
 0x4a7   :  { %2372 = vpow2.f32 %v400_v45  ;;  %v399_v48 = vsub.f32 %v382_v18, %v395_v47  ;;  %v2340_v45 = vld [vmem:[#allocation5] sm:$0xff]   ;;  %v2341_v47 = vld [vmem:[#allocation5 + $0x8] sm:$0xff]  }
 0x4a8   :  { %2146 = vmatpush3.bf16.msra.mxu1 %v2340_v45 }
 0x4a9   :  { %v406_v49 = vmul.f32 1.442695, %v399_v48  ;;  %2147 = vmatprep.subr.bf16.mxu1 %v2615_v7 }
 0x4ab   :  { %2374 = vpow2.f32 %v406_v49 }
 0x4ac   :  { %2148 = vmatpush3.bf16.msra.mxu1 %v2341_v47 }
 0x4ad   :  { %v2369_v50 = vpop.eup %2368  ;;  %2161 = vmatprep.subr.bf16.mxu1 %v2615_v7 }
 0x4ae   :  { %v414_v53 = vsel %vm383_vm5, %v2369_v50, 0.0 }
 0x4b0   :  { %v2371_v51 = vpop.eup %2370 }
 0x4b1   :  { %v2373_v52 = vpop.eup %2372  ;;  %v411_v29 = vsel %vm383_vm5, %v2371_v51, 0.0 }
 0x4b2   :  { %v420_v46 = vpack.c.bf16 %v2371_v51, %v2373_v52 }
 0x4b4   :  { %2129 = vmatprep.mubr.msk.bf16.mxu0 %vm383_vm5, %v420_v46 }
 0x4b5   :  { %v2375_v54 = vpop.eup %2374  ;;  %415 = vadd.xlane.f32.xlu1 %v414_v53 }
 0x4b6   :  { %v417_v55 = vsel %vm383_vm5, %v2375_v54, 0.0  ;;  %v421_v56 = vpack.c.bf16 %v2375_v54, %v2369_v50 }
 0x4b7   :  { %418 = vadd.xlane.f32.xlu0 %v417_v55 }
 0x509   :  { %v569_v57 = vpop.xlane.xlu1 %568 }
 0x50a   :  { %v575_v60 = vsub.f32 %v559_v28, %v569_v57  ;;  %v408_v28 = vsel %vm383_vm5, %v2373_v52, 0.0 }
 0x50b   :  { %v572_v62 = vpop.xlane.xlu0 %571 }
 0x50c   :  { %v576_v63 = vsub.f32 %v560_v31, %v572_v62  ;;  %v581_v2 = vmul.f32 1.442695, %v575_v60 }
 0x50d   :  { %v563_v3 = vpop.xlane.xlu1 %562 }
 0x50e   :  { %v573_v4 = vsub.f32 %v557_v32, %v563_v3  ;;  %v583_v5 = vmul.f32 1.442695, %v576_v63  ;;  %2376 = vpow2.f32 %v581_v2 }
 0x50f   :  { %v566_v8 = vpop.xlane.xlu0 %565 }
 0x510   :  { %v577_v12 = vmul.f32 1.442695, %v573_v4  ;;  %v574_v13 = vsub.f32 %v558_v34, %v566_v8 }
 0x511   :  { %v423_v14 = vpop.permute.xlu1 %422 }
 0x512   :  { %2378 = vpow2.f32 %v577_v12  ;;  %v579_v15 = vmul.f32 1.442695, %v574_v13  ;;  %2127 = vmatprep.subr.bf16.mxu0 %v423_v14 }
 0x513   :  { %2380 = vpow2.f32 %v583_v5  ;;  %2128 = vmatpush3.bf16.msra.mxu0 %v423_v14  ;;  %v600_v16 = vpop.permute.xlu0 %599 }
 0x514   :  { %2382 = vpow2.f32 %v579_v15  ;;  %2139 = vmatprep.subr.bf16.mxu0 %v600_v16 }
 0x516   :  { %2130 = vmatmul.mubr.msk.bf16.vlgmr.msra.gmra.mrb[8].mxu0 %vm383_vm5, %v421_v56 }
 0x517   :  { %2140 = vmatpush3.bf16.msra.mxu0 %v600_v16 }
 0x518   :  { %2153 = vmatprep.subr.bf16.mxu0 %v2615_v7  ;;  %v2377_v17 = vpop.eup %2376 }
 0x519   :  { %v591_v25 = vsel %vm383_vm5, %v2377_v17, 0.0 }
 0x51c   :  { %v2379_v18 = vpop.eup %2378 }
 0x51d   :  { %v2381_v19 = vpop.eup %2380  ;;  %v585_v20 = vsel %vm383_vm5, %v2379_v18, 0.0 }
 0x51e   :  { %v2383_v21 = vpop.eup %2382  ;;  %586 = vadd.xlane.f32.xlu1 %v585_v20  ;;  %v598_v24 = vpack.c.bf16 %v2381_v19, %v2377_v17  ;;  %v594_v27 = vsel %vm383_vm5, %v2381_v19, 0.0 }
 0x51f   :  { %v588_v22 = vsel %vm383_vm5, %v2383_v21, 0.0  ;;  %v597_v23 = vpack.c.bf16 %v2383_v21, %v2379_v18 }
 0x520   :  { %589 = vadd.xlane.f32.xlu0 %v588_v22 }
 0x521   :  { %2141 = vmatprep.mubr.msk.bf16.mxu0 %vm383_vm5, %v597_v23 }
 0x522   :  { %592 = vadd.xlane.f32.xlu1 %v591_v25  ;;  %2142 = vmatmul.mubr.msk.bf16.vlgmr.msra.gmra.mrb[12].mxu0 %vm383_vm5, %v598_v24 }
 0x523   :  { %2157 = vmatprep.mubr.msk.bf16.mxu0 %vm2616_vm1, %v2615_v7 }
 0x524   :  { %595 = vadd.xlane.f32.xlu0 %v594_v27 }
 0x526   :  { %409 = vadd.xlane.f32.xlu1 %v408_v28 }
 0x528   :  { %412 = vadd.xlane.f32.xlu0 %v411_v29 }
 0x542   :  { %v416_v30 = vpop.xlane.xlu1 %415 }
 0x543   :  { %2384 = vrcp.f32 %v416_v30 }
 0x544   :  { %v419_v31 = vpop.xlane.xlu0 %418 }
 0x545   :  { %2386 = vrcp.f32 %v419_v31 }
 0x54d   :  { %v2385_v36 = vpop.eup %2384 }
 0x54f   :  { %v2387_v39 = vpop.eup %2386 }
 0x5ab   :  { %v587_v32 = vpop.xlane.xlu1 %586 }
 0x5ac   :  { %2388 = vrcp.f32 %v587_v32 }
 0x5ad   :  { %v590_v33 = vpop.xlane.xlu0 %589 }
 0x5af   :  { %v593_v34 = vpop.xlane.xlu1 %592 }
 0x5b0   :  { %2390 = vrcp.f32 %v593_v34 }
 0x5b1   :  { %v596_v37 = vpop.xlane.xlu0 %595 }
 0x5b2   :  { %2392 = vrcp.f32 %v596_v37 }
 0x5b3   :  { %2394 = vrcp.f32 %v590_v33  ;;  %v410_v2 = vpop.xlane.xlu1 %409 }
 0x5b4   :  { %2396 = vrcp.f32 %v410_v2 }
 0x5b5   :  { %v413_v3 = vpop.xlane.xlu0 %412 }
 0x5b6   :  { %v2389_v48 = vpop.eup %2388  ;;  %2398 = vrcp.f32 %v413_v3 }
 0x5ba   :  { %v2391_v50 = vpop.eup %2390 }
 0x5bc   :  { %v2393_v52 = vpop.eup %2392 }
 0x5bd   :  { %v2395_v53 = vpop.eup %2394 }
 0x5be   :  { %v2397_v5 = vpop.eup %2396 }
 0x5c0   :  { %v2399_v13 = vpop.eup %2398 }
 0x5e9   :  { %v2131_v35 = vpop.f32.mrb[8].mxu0 }
 0x5ea   :  { %v465_v38 = vpop.f32.mrb[9].mxu0  ;;  %v486_v41 = vmul.f32 %v2385_v36, %v2131_v35 }
 0x5eb   :  { %v2132_v40 = vpop.f32.mrb[10].mxu0  ;;  %v484_v15 = vmul.f32 %v2397_v5, %v465_v38 }
 0x5ec   :  { %v487_v42 = vmul.f32 %v2387_v39, %v2132_v40  ;;  %v468_v43 = vpop.f32.mrb[11].mxu0  ;;  %v2343_v40 = vld [vmem:[#allocation10] sm:$0xff]  }
 0x5ed   :  { %v485_v16 = vmul.f32 %v2399_v13, %v468_v43 }
 0x5ee   :  { %v2299_v44 = vpack.i.bf16 %v487_v42, %v486_v41  ;;  %v2344_v41 = vld [vmem:[#allocation8 + $0x8] sm:$0xff]  }
 0x5f0   :  { %2300 = vrot.lane.b32.xlu1 %v2299_v44, %s2610_s28 }
 0x5f5   :  { %v2143_v49 = vpop.f32.mrb[12].mxu0 }
 0x5f6   :  { %v642_v51 = vpop.f32.mrb[13].mxu0  ;;  %v663_v54 = vmul.f32 %v2391_v50, %v2143_v49 }
 0x5f7   :  { %v2144_v46 = vpop.f32.mrb[14].mxu0  ;;  %v661_v57 = vmul.f32 %v2389_v48, %v642_v51 }
 0x5f8   :  { %v664_v55 = vmul.f32 %v2393_v52, %v2144_v46  ;;  %v645_v56 = vpop.f32.mrb[15].mxu0  ;;  %v1965_v52 = vld [vmem:[#allocation7] ss:$0 sm:$0xff] }
 0x5f9   :  { %v662_v60 = vmul.f32 %v2395_v53, %v645_v56  ;;  %v2346_v56 = vld [vmem:[%s3194_s11] sm:$0xff]  }
 0x5fa   :  { %v2309_v62 = vpack.i.bf16 %v664_v55, %v663_v54 }
 0x5fb   :  { %v2304_v63 = vpack.i.bf16 %v662_v60, %v661_v57  ;;  %v2347_v57 = vld [vmem:[%s3194_s11 + $0x8] sm:$0xff]   ;;  %v2348_v60 = vld [vmem:[%s3194_s11 + $0x10] sm:$0xff]  }
 0x5fc   :  { %2310 = vrot.lane.b32.xlu1 %v2309_v62, %s2623_s8  ;;  %v2349_v62 = vld [vmem:[%s3194_s11 + $0x18] sm:$0xff]  }
 0x5fd   :  { %2305 = vrot.lane.b32.xlu0 %v2304_v63, %s2612_s0 }
 0x662   :  { %v2301_v4 = vpop.permute.xlu1 %2300 }
 0x663   :  { %v2303_v8 = vunpack.i.h.bf16 %v2301_v4  ;;  %v2302_v12 = vunpack.i.l.bf16 %v2301_v4 }
 0x665   :  { %v689_v20 = vsel %vm316_vm3, %v484_v15, %v2302_v12  ;;  %v690_v21 = vsel %vm316_vm3, %v485_v16, %v2303_v8 }
 0x66e   :  { %v2311_v14 = vpop.permute.xlu1 %2310 }
 0x66f   :  { %v2306_v17 = vpop.permute.xlu0 %2305  ;;  %v2313_v22 = vunpack.i.h.bf16 %v2311_v14  ;;  %v2312_v23 = vunpack.i.l.bf16 %v2311_v14 }
 0x670   :  { %v2308_v18 = vunpack.i.h.bf16 %v2306_v17  ;;  %v2307_v19 = vunpack.i.l.bf16 %v2306_v17 }
 0x672   :  { %v692_v24 = vsel %vm383_vm5, %v690_v21, %v2308_v18  ;;  %v691_v25 = vsel %vm383_vm5, %v689_v20, %v2307_v19 }
 0x673   :  { %v695_v27 = vsel %vm693_vm9, %v692_v24, %v2313_v22  ;;  %v694_v28 = vsel %vm693_vm9, %v691_v25, %v2312_v23 }
 0x674   :  { %v700_v29 = vpack.c.bf16 %v695_v27, %v694_v28 }
 0x676   :  { %2150 = vmatmul.mubr.msk.bf16.vlgmr.msra.gmra.mrb[8].mxu1 %vm142_vm0, %v700_v29 }
 0x677   :  { %2165 = vmatprep.mubr.msk.bf16.mxu1 %vm2616_vm1, %v2615_v7  ;;  %2162 = vmatpush3.bf16.msra.mxu1 %v2343_v40 }
 0x678   :  { %2163 = vmatprep.subr.bf16.mxu1 %v2615_v7 }
 0x749   :  { %v750_v30 = vpop.f32.mrb[8].mxu1 }
 0x74a   :  { %v2947_v31 = vadd.f32 %v750_v30, %v2774_v0  ;;  %v2151_v32 = vpop.f32.mrb[9].mxu1  ;;  %v2342_v0 = vld [vmem:[#allocation8] sm:$0xff]  }
 0x74b   :  { %v753_v33 = vpop.f32.mrb[10].mxu1  ;;  %2154 = vmatpush3.bf16.msra.mxu0 %v2342_v0 }
 0x74c   :  { %v2950_v34 = vadd.f32 %v753_v33, %v2776_v1  ;;  %v2152_v35 = vpop.f32.mrb[11].mxu1  ;;  %v760_v36 = vmul.f32 %v2947_v31, %v2947_v31  ;;  %v2345_v1 = vld [vmem:[#allocation10 + $0x8] sm:$0xff]   ;;  %2155 = vmatprep.subr.bf16.mxu0 %v2615_v7 }
 0x74d   :  { %2164 = vmatpush3.bf16.msra.mxu1 %v2345_v1 }
 0x74e   :  { %v762_v37 = vsel %vm142_vm0, %v760_v36, 0.0  ;;  %v761_v38 = vmul.f32 %v2950_v34, %v2950_v34  ;;  %2181 = vmatprep.subr.bf16.mxu1 %v2615_v7 }
 0x74f   :  { %763 = vadd.xlane.f32.xlu1 %v762_v37  ;;  %2156 = vmatpush3.bf16.msra.mxu0 %v2344_v41 }
 0x750   :  { %v765_v39 = vsel %vm142_vm0, %v761_v38, 0.0  ;;  %2169 = vmatprep.subr.bf16.mxu0 %v2615_v7 }
 0x751   :  { %766 = vadd.xlane.f32.xlu0 %v765_v39 }
 0x7dc   :  { %v764_v42 = vpop.xlane.xlu1 %763 }
 0x7dd   :  { %v768_v43 = vmul.f32 0.03125, %v764_v42 }
 0x7de   :  { %v767_v44 = vpop.xlane.xlu0 %766 }
 0x7df   :  { %v770_v45 = vadd.f32 1e-06, %v768_v43  ;;  %v769_v47 = vmul.f32 0.03125, %v767_v44 }
 0x7e1   :  { %2400 = vrsqrt.f32 %v770_v45  ;;  %v771_v48 = vadd.f32 1e-06, %v769_v47 }
 0x7e3   :  { %2402 = vrsqrt.f32 %v771_v48  ;;  %v1984_v48 = vld [vmem:[%s3188_s5 + $0x1] ss:$0 sm:$0xff] }
 0x7eb   :  { %v2401_v49 = vpop.eup %2400 }
 0x7ec   :  { %v774_v50 = vmul.f32 %v2401_v49, %v2947_v31 }
 0x7ed   :  { %v2403_v51 = vpop.eup %2402 }
 0x7ee   :  { %v775_v46 = vmul.f32 %v2403_v51, %v2950_v34  ;;  %v782_v53 = vmul.f32 %v1965_v52, %v774_v50 }
 0x7f0   :  { %v783_v54 = vmul.f32 %v1965_v52, %v775_v46 }
 0x7f2   :  { %v788_v55 = vpack.c.bf16 %v783_v54, %v782_v53 }
 0x7f4   :  { %2158 = vmatmul.mubr.msk.bf16.vlgmr.msra.gmra.mrb[16].mxu0 %vm142_vm0, %v788_v55  ;;  %2166 = vmatmul.mubr.msk.bf16.vlgmr.msra.gmra.mrb[12].mxu1 %vm142_vm0, %v788_v55 }
 0x7f5   :  { %2177 = vmatprep.mubr.msk.bf16.mxu0 %vm2616_vm1, %v2615_v7  ;;  %2185 = vmatprep.mubr.msk.bf16.mxu1 %vm2616_vm1, %v2615_v7 }
 0x7f6   :  { %2170 = vmatpush3.bf16.msra.mxu0 %v2346_v56  ;;  %v1979_v56 = vld [vmem:[%s3185_s2 + $0x10] sm:$0xff] }
 0x7f7   :  { %2171 = vmatprep.subr.bf16.mxu0 %v2615_v7 }
 0x7fa   :  { %2172 = vmatpush3.bf16.msra.mxu0 %v2347_v57  ;;  %v1982_v57 = vld [vmem:[%s3186_s3 + $0x18] sm:$0xff] }
 0x7fb   :  { %2173 = vmatprep.subr.bf16.mxu0 %v2615_v7 }
 0x7fe   :  { %2174 = vmatpush3.bf16.msra.mxu0 %v2348_v60 }
 0x7ff   :  { %2175 = vmatprep.subr.bf16.mxu0 %v2615_v7 }
 0x802   :  { %2176 = vmatpush3.bf16.msra.mxu0 %v2349_v62 }
 0x8c7   :  { %v838_v63 = vpop.f32.mrb[16].mxu0  ;;  %v895_v2 = vpop.f32.mrb[12].mxu1 }
 0x8c8   :  { %v1972_v3 = vmul.f32 -1.442695, %v838_v63  ;;  %v2159_v4 = vpop.f32.mrb[17].mxu0  ;;  %v2167_v5 = vpop.f32.mrb[13].mxu1 }
 0x8c9   :  { %v841_v8 = vpop.f32.mrb[18].mxu0  ;;  %v898_v12 = vpop.f32.mrb[14].mxu1 }
 0x8ca   :  { %2404 = vpow2.f32 %v1972_v3  ;;  %v1973_v13 = vmul.f32 -1.442695, %v841_v8  ;;  %v2160_v14 = vpop.f32.mrb[19].mxu0  ;;  %v2168_v15 = vpop.f32.mrb[15].mxu1 }
 0x8cc   :  { %2406 = vpow2.f32 %v1973_v13 }
 0x8d4   :  { %v2405_v16 = vpop.eup %2404 }
 0x8d5   :  { %v908_v17 = vadd.f32 1.0, %v2405_v16 }
 0x8d6   :  { %v2407_v18 = vpop.eup %2406 }
 0x8d7   :  { %2408 = vrcp.f32 %v908_v17  ;;  %v909_v19 = vadd.f32 1.0, %v2407_v18 }
 0x8d9   :  { %2410 = vrcp.f32 %v909_v19 }
 0x8e1   :  { %v2409_v20 = vpop.eup %2408 }
 0x8e2   :  { %v914_v21 = vmul.f32 %v2409_v20, %v838_v63 }
 0x8e3   :  { %v2411_v22 = vpop.eup %2410 }
 0x8e4   :  { %v916_v23 = vmul.f32 %v914_v21, %v895_v2  ;;  %v915_v24 = vmul.f32 %v2411_v22, %v841_v8 }
 0x8e6   :  { %v917_v25 = vmul.f32 %v915_v24, %v898_v12 }
 0x8e8   :  { %v926_v27 = vpack.c.bf16 %v917_v25, %v916_v23 }
 0x8ea   :  { %2178 = vmatmul.mubr.msk.bf16.vlgmr.msra.gmra.mrb[20].mxu0 %vm254_vm2, %v926_v27 }
 0x9bd   :  { %v988_v28 = vpop.f32.mrb[20].mxu0 }
 0x9be   :  { %v2987_v29 = vadd.f32 %v988_v28, %v2947_v31  ;;  %v2179_v30 = vpop.f32.mrb[21].mxu0  ;;  %v2350_v31 = vld [vmem:[%s3189_s6 + $0x10] sm:$0xff]  }
 0x9bf   :  { %v991_v32 = vpop.f32.mrb[22].mxu0  ;;  %2182 = vmatpush3.bf16.msra.mxu1 %v2350_v31 }
 0x9c0   :  { %v2990_v33 = vadd.f32 %v991_v32, %v2950_v34  ;;  %v2180_v35 = vpop.f32.mrb[23].mxu0  ;;  %v1005_v36 = vmul.f32 %v2987_v29, %v2987_v29  ;;  %v2351_v34 = vld [vmem:[%s3189_s6 + $0x18] sm:$0xff]   ;;  %2183 = vmatprep.subr.bf16.mxu1 %v2615_v7 }
 0x9c2   :  { %v1007_v37 = vsel %vm142_vm0, %v1005_v36, 0.0  ;;  %v1006_v38 = vmul.f32 %v2990_v33, %v2990_v33 }
 0x9c3   :  { %1008 = vadd.xlane.f32.xlu0 %v1007_v37  ;;  %2184 = vmatpush3.bf16.msra.mxu1 %v2351_v34 }
 0x9c4   :  { %v1010_v39 = vsel %vm142_vm0, %v1006_v38, 0.0  ;;  %2189 = vmatprep.subr.bf16.mxu1 %v2615_v7 }
 0x9c5   :  { %1011 = vadd.xlane.f32.xlu1 %v1010_v39 }
 0xa50   :  { %v1009_v0 = vpop.xlane.xlu0 %1008 }
 0xa51   :  { %v1013_v40 = vmul.f32 0.03125, %v1009_v0 }
 0xa52   :  { %v1012_v41 = vpop.xlane.xlu1 %1011 }
 0xa53   :  { %v1015_v1 = vadd.f32 1e-06, %v1013_v40  ;;  %v1014_v42 = vmul.f32 0.03125, %v1012_v41 }
 0xa55   :  { %2412 = vrsqrt.f32 %v1015_v1  ;;  %v1016_v43 = vadd.f32 1e-06, %v1014_v42 }
 0xa57   :  { %2414 = vrsqrt.f32 %v1016_v43 }
 0xa5f   :  { %v2413_v44 = vpop.eup %2412 }
 0xa60   :  { %v1019_v45 = vmul.f32 %v2413_v44, %v2987_v29 }
 0xa61   :  { %v2415_v47 = vpop.eup %2414 }
 0xa62   :  { %v1020_v49 = vmul.f32 %v2415_v47, %v2990_v33  ;;  %v1027_v50 = vmul.f32 %v1984_v48, %v1019_v45 }
 0xa64   :  { %v1028_v51 = vmul.f32 %v1984_v48, %v1020_v49 }
 0xa66   :  { %v1034_v52 = vpack.c.bf16 %v1028_v51, %v1027_v50 }
 0xa68   :  { %2186 = vmatmul.mubr.msk.bf16.vlgmr.msra.gmra.mrb[16].mxu1 %vm142_vm0, %v1034_v52 }
 0xa69   :  { %2190 = vmatpush3.bf16.msra.mxu1 %v2800_v9  ;;  %2197 = vmatprep.mubr.msk.bf16.mxu1 %vm2616_vm1, %v2615_v7 }
 0xa6a   :  { %2191 = vmatprep.subr.bf16.mxu1 %v2615_v7 }
 0xa6d   :  { %2192 = vmatpush3.bf16.msra.mxu1 %v2806_v10  ;;  %v1981_v10 = vld [vmem:[%s3186_s3 + $0x10] sm:$0xff] }
 0xa6e   :  { %2193 = vmatprep.subr.bf16.mxu1 %v2615_v7 }
 0xa71   :  { %2194 = vmatpush3.bf16.msra.mxu1 %v2813_v11  ;;  %v1980_v11 = vld [vmem:[%s3185_s2 + $0x18] sm:$0xff] }
 0xa72   :  { %2195 = vmatprep.subr.bf16.mxu1 %v2615_v7 }
 0xa75   :  { %2196 = vmatpush3.bf16.msra.mxu1 %v2827_v26 }
 0xb3b   :  { %v1084_v46 = vpop.f32.mrb[16].mxu1 }
 0xb3c   :  { %v2187_v53 = vpop.f32.mrb[17].mxu1  ;;  %v1091_v60 = vmul.f32 %v1979_v56, %v1084_v46 }
 0xb3d   :  { %v1087_v54 = vpop.f32.mrb[18].mxu1 }
 0xb3e   :  { %v1093_v55 = vpack.c.bf16 %v1087_v54, %v1084_v46  ;;  %v2188_v9 = vpop.f32.mrb[19].mxu1  ;;  %v1092_v3 = vmul.f32 %v1980_v11, %v1087_v54 }
 0xb40   :  { %2198 = vmatmul.mubr.msk.bf16.vlgmr.msra.gmra.mrb[20].mxu1 %vm254_vm2, %v1093_v55 }
 0xc13   :  { %v1131_v26 = vpop.f32.mrb[20].mxu1 }
 0xc14   :  { %v1138_v62 = vmul.f32 %v1981_v10, %v1131_v26  ;;  %v2199_v63 = vpop.f32.mrb[21].mxu1 }
 0xc15   :  { %v1134_v2 = vpop.f32.mrb[22].mxu1 }
 0xc16   :  { %v1140_v4 = vadd.f32 %v1138_v62, %v1091_v60  ;;  %v1139_v5 = vmul.f32 %v1982_v57, %v1134_v2  ;;  %v2200_v8 = vpop.f32.mrb[23].mxu1 }
 0xc18   :  { %v1141_v12 = vadd.f32 %v1139_v5, %v1092_v3 }
 0xc1a   :  { %v3034_v13 = vpack.c.bf16 %v1141_v12, %v1140_v4  ;;  %v2314_v14 = vpack.i.bf16 %v1141_v12, %v1140_v4 }
 0xc1c   :  { %2315 = vrot.lane.b32.xlu0 %v2314_v14, %s2617_s15  ;;  %1153 = vrot.lane.b32.xlu1 %v3034_v13, %s2619_s21 }
 0xc1d   :  { %2203 = vmatprep.mubr.msk.bf16.mxu0 %vm316_vm3, %v3034_v13 }
 0xc20   :  { %1326 = vrot.lane.b32.xlu0 %v3034_v13, %s2620_s22  ;;  %1330 = vrot.lane.b32.xlu1 %v3034_v13, %s2618_s20 }
 0xc8e   :  { %v2316_v15 = vpop.permute.xlu0 %2315  ;;  %v1154_v16 = vpop.permute.xlu1 %1153 }
 0xc8f   :  { %v2318_v17 = vunpack.i.h.bf16 %v2316_v15  ;;  %v2317_v18 = vunpack.i.l.bf16 %v2316_v15  ;;  %v1162_v19 = vsel %vm316_vm3, %v1154_v16, 0  ;;  %2271 = vmatprep.subr.msk.bf16.mxu0 %vm316_vm3, %v1154_v16 }
 0xc90   :  { %2202 = vmatpush3.bf16.xpose.msra.mxu0 %v1162_v19 }
 0xc91   :  { %v1151_v20 = vpack.c.bf16 %v2318_v17, %v2317_v18 }
 0xc92   :  { %v1327_v21 = vpop.permute.xlu0 %1326  ;;  %v1331_v22 = vpop.permute.xlu1 %1330 }
 0xc93   :  { %v1339_v23 = vsel %vm316_vm3, %v1331_v22, 0  ;;  %2215 = vmatprep.mubr.msk.bf16.mxu1 %vm316_vm3, %v1327_v21  ;;  %1328 = vrot.lane.b32.xlu1 %v1151_v20, %s2620_s22 }
 0xc94   :  { %2272 = vmatprep.subr.msk.bf16.mxu1 %vm316_vm3, %v1331_v22 }
 0xc95   :  { %2214 = vmatpush3.bf16.xpose.msra.mxu1 %v1339_v23 }
 0xc96   :  { %2225 = vmatprep.subr.bf16.mxu1 %v2615_v7 }
 0xc97   :  { %2204 = vmatmul.mubr.msk.bf16.vlgmr.msra.gmra.mrb[24].mxu0 %vm316_vm3, %v1151_v20 }
 0xd05   :  { %v1329_v24 = vpop.permute.xlu1 %1328 }
 0xd06   :  { %2216 = vmatmul.mubr.msk.bf16.vlgmr.msra.gmra.mrb[24].mxu1 %vm316_vm3, %v1329_v24 }
 0xd07   :  { %2229 = vmatprep.mubr.msk.bf16.mxu1 %vm2616_vm1, %v2615_v7 }
 0xd6a   :  { %v2205_v25 = vpop.f32.mrb[24].mxu0 }
 0xd6b   :  { %v1215_v27 = vmul.f32 0.35355338, %v2205_v25  ;;  %v1198_v28 = vpop.f32.mrb[25].mxu0 }
 0xd6c   :  { %v1213_v30 = vmul.f32 0.35355338, %v1198_v28  ;;  %v2206_v32 = vpop.f32.mrb[26].mxu0 }
 0xd6d   :  { %v1201_v35 = vpop.f32.mrb[27].mxu0  ;;  %v1219_v36 = vsel %vm125_vm4, -3.4028235e+38, %v1215_v27  ;;  %v1216_v39 = vmul.f32 0.35355338, %v2206_v32 }
 0xd6e   :  { %v1214_v37 = vmul.f32 0.35355338, %v1201_v35  ;;  %v1227_v38 = vsel %vm383_vm5, %v1219_v36, -inf  ;;  %v1217_v31 = vsel %vm123_vm6, -3.4028235e+38, %v1213_v30 }
 0xd6f   :  { %1228 = vmax.xlane.f32.xlu0 %v1227_v38  ;;  %v1221_v40 = vsel %vm383_vm5, %v1217_v31, -inf  ;;  %v1220_v41 = vsel %vm126_vm8, -3.4028235e+38, %v1216_v39 }
 0xd70   :  { %v1218_v34 = vsel %vm124_vm7, -3.4028235e+38, %v1214_v37  ;;  %v1230_v1 = vsel %vm383_vm5, %v1220_v41, -inf }
 0xd71   :  { %v1224_v0 = vsel %vm383_vm5, %v1218_v34, -inf }
 0xd72   :  { %1225 = vmax.xlane.f32.xlu1 %v1224_v0 }
 0xd73   :  { %1222 = vmax.xlane.f32.xlu0 %v1221_v40 }
 0xd77   :  { %1231 = vmax.xlane.f32.xlu0 %v1230_v1 }
 0xdd9   :  { %v2217_v42 = vpop.f32.mrb[24].mxu1 }
 0xdda   :  { %v1392_v43 = vmul.f32 0.35355338, %v2217_v42  ;;  %v1375_v44 = vpop.f32.mrb[25].mxu1 }
 0xddb   :  { %v1390_v45 = vmul.f32 0.35355338, %v1375_v44  ;;  %v2218_v47 = vpop.f32.mrb[26].mxu1 }
 0xddc   :  { %v1393_v48 = vmul.f32 0.35355338, %v2218_v47  ;;  %v1378_v49 = vpop.f32.mrb[27].mxu1  ;;  %v1396_v50 = vsel %vm125_vm4, -3.4028235e+38, %v1392_v43 }
 0xddd   :  { %v1391_v51 = vmul.f32 0.35355338, %v1378_v49  ;;  %v1404_v52 = vsel %vm383_vm5, %v1396_v50, -inf  ;;  %v1394_v53 = vsel %vm123_vm6, -3.4028235e+38, %v1390_v45 }
 0xdde   :  { %1405 = vmax.xlane.f32.xlu1 %v1404_v52  ;;  %v1397_v46 = vsel %vm126_vm8, -3.4028235e+38, %v1393_v48  ;;  %v1398_v9 = vsel %vm383_vm5, %v1394_v53, -inf }
 0xddf   :  { %v1407_v54 = vsel %vm383_vm5, %v1397_v46, -inf  ;;  %v1395_v55 = vsel %vm124_vm7, -3.4028235e+38, %v1391_v51 }
 0xde0   :  { %1408 = vmax.xlane.f32.xlu0 %v1407_v54  ;;  %v1401_v58 = vsel %vm383_vm5, %v1395_v55, -inf }
 0xde2   :  { %1399 = vmax.xlane.f32.xlu1 %v1398_v9 }
 0xde4   :  { %1402 = vmax.xlane.f32.xlu0 %v1401_v58 }
 0xdf3   :  { %1259 = vrot.lane.b32.xlu1 %v3034_v13, %s2621_s1 }
 0xdfa   :  { %1436 = vrot.lane.b32.xlu0 %v3034_v13, %s2622_s19 }
 0xdfc   :  { %v1229_v59 = vpop.xlane.xlu0 %1228 }
 0xdfd   :  { %v1235_v56 = vsub.f32 %v1219_v36, %v1229_v59  ;;  %v2352_v59 = vld [vmem:[#allocation5 + $0x10] sm:$0xff]  }
 0xdfe   :  { %2226 = vmatpush3.bf16.msra.mxu1 %v2352_v59 }
 0xdff   :  { %v1226_v6 = vpop.xlane.xlu1 %1225  ;;  %v1241_v60 = vmul.f32 1.442695, %v1235_v56  ;;  %2227 = vmatprep.subr.bf16.mxu1 %v2615_v7 }
 0xe00   :  { %v1234_v10 = vsub.f32 %v1218_v34, %v1226_v6  ;;  %v1223_v11 = vpop.xlane.xlu0 %1222  ;;  %v2353_v6 = vld [vmem:[#allocation5 + $0x18] sm:$0xff]  }
 0xe01   :  { %v1233_v26 = vsub.f32 %v1217_v31, %v1223_v11 }
 0xe02   :  { %v1239_v61 = vmul.f32 1.442695, %v1234_v10  ;;  %2228 = vmatpush3.bf16.msra.mxu1 %v2353_v6 }
 0xe03   :  { %v1237_v57 = vmul.f32 1.442695, %v1233_v26  ;;  %2241 = vmatprep.subr.bf16.mxu1 %v2615_v7 }
 0xe04   :  { %2416 = vpow2.f32 %v1239_v61  ;;  %v1232_v62 = vpop.xlane.xlu0 %1231 }
 0xe05   :  { %2418 = vpow2.f32 %v1237_v57  ;;  %v1236_v63 = vsub.f32 %v1220_v41, %v1232_v62 }
 0xe06   :  { %2420 = vpow2.f32 %v1241_v60 }
 0xe07   :  { %v1243_v2 = vmul.f32 1.442695, %v1236_v63 }
 0xe09   :  { %2422 = vpow2.f32 %v1243_v2 }
 0xe0e   :  { %v2417_v3 = vpop.eup %2416 }
 0xe0f   :  { %v2419_v4 = vpop.eup %2418  ;;  %v1248_v42 = vsel %vm383_vm5, %v2417_v3, 0.0 }
 0xe10   :  { %v1257_v5 = vpack.c.bf16 %v2417_v3, %v2419_v4  ;;  %v2421_v8 = vpop.eup %2420  ;;  %v1245_v1 = vsel %vm383_vm5, %v2419_v4, 0.0 }
 0xe11   :  { %v1251_v14 = vsel %vm383_vm5, %v2421_v8, 0.0 }
 0xe12   :  { %2209 = vmatprep.mubr.msk.bf16.mxu0 %vm383_vm5, %v1257_v5 }
 0xe13   :  { %v2423_v12 = vpop.eup %2422 }
 0xe14   :  { %v1258_v13 = vpack.c.bf16 %v2423_v12, %v2421_v8  ;;  %v1254_v15 = vsel %vm383_vm5, %v2423_v12, 0.0 }
 0xe17   :  { %1252 = vadd.xlane.f32.xlu1 %v1251_v14 }
 0xe19   :  { %1255 = vadd.xlane.f32.xlu0 %v1254_v15 }
 0xe6b   :  { %v1406_v16 = vpop.xlane.xlu1 %1405 }
 0xe6c   :  { %v1412_v17 = vsub.f32 %v1396_v50, %v1406_v16 }
 0xe6d   :  { %v1409_v18 = vpop.xlane.xlu0 %1408 }
 0xe6e   :  { %v1413_v19 = vsub.f32 %v1397_v46, %v1409_v18  ;;  %v1418_v20 = vmul.f32 1.442695, %v1412_v17 }
 0xe6f   :  { %v1400_v21 = vpop.xlane.xlu1 %1399 }
 0xe70   :  { %v1410_v22 = vsub.f32 %v1394_v53, %v1400_v21  ;;  %v1420_v23 = vmul.f32 1.442695, %v1413_v19  ;;  %2424 = vpow2.f32 %v1418_v20 }
 0xe71   :  { %v1403_v24 = vpop.xlane.xlu0 %1402 }
 0xe72   :  { %v1414_v25 = vmul.f32 1.442695, %v1410_v22  ;;  %v1411_v27 = vsub.f32 %v1395_v55, %v1403_v24 }
 0xe73   :  { %v1260_v28 = vpop.permute.xlu1 %1259 }
 0xe74   :  { %2426 = vpow2.f32 %v1414_v25  ;;  %v1416_v30 = vmul.f32 1.442695, %v1411_v27  ;;  %2207 = vmatprep.subr.bf16.mxu0 %v1260_v28 }
 0xe75   :  { %2428 = vpow2.f32 %v1420_v23  ;;  %2208 = vmatpush3.bf16.msra.mxu0 %v1260_v28  ;;  %v1437_v32 = vpop.permute.xlu0 %1436 }
 0xe76   :  { %2430 = vpow2.f32 %v1416_v30  ;;  %2219 = vmatprep.subr.bf16.mxu0 %v1437_v32 }
 0xe78   :  { %2210 = vmatmul.mubr.msk.bf16.vlgmr.msra.gmra.mrb[28].mxu0 %vm383_vm5, %v1258_v13 }
 0xe79   :  { %2220 = vmatpush3.bf16.msra.mxu0 %v1437_v32 }
 0xe7a   :  { %2233 = vmatprep.subr.bf16.mxu0 %v2615_v7  ;;  %v2425_v35 = vpop.eup %2424 }
 0xe7b   :  { %v1428_v40 = vsel %vm383_vm5, %v2425_v35, 0.0 }
 0xe7e   :  { %v2427_v36 = vpop.eup %2426 }
 0xe7f   :  { %v2429_v37 = vpop.eup %2428  ;;  %v1422_v38 = vsel %vm383_vm5, %v2427_v36, 0.0 }
 0xe80   :  { %v2431_v39 = vpop.eup %2430  ;;  %1423 = vadd.xlane.f32.xlu1 %v1422_v38  ;;  %v1435_v0 = vpack.c.bf16 %v2429_v37, %v2425_v35  ;;  %v1431_v41 = vsel %vm383_vm5, %v2429_v37, 0.0 }
 0xe81   :  { %v1425_v31 = vsel %vm383_vm5, %v2431_v39, 0.0  ;;  %v1434_v34 = vpack.c.bf16 %v2431_v39, %v2427_v36 }
 0xe82   :  { %1426 = vadd.xlane.f32.xlu0 %v1425_v31 }
 0xe83   :  { %2221 = vmatprep.mubr.msk.bf16.mxu0 %vm383_vm5, %v1434_v34 }
 0xe84   :  { %1429 = vadd.xlane.f32.xlu1 %v1428_v40  ;;  %2222 = vmatmul.mubr.msk.bf16.vlgmr.msra.gmra.mrb[32].mxu0 %vm383_vm5, %v1435_v0 }
 0xe85   :  { %2237 = vmatprep.mubr.msk.bf16.mxu0 %vm2616_vm1, %v2615_v7 }
 0xe86   :  { %1432 = vadd.xlane.f32.xlu0 %v1431_v41 }
 0xe88   :  { %1246 = vadd.xlane.f32.xlu1 %v1245_v1 }
 0xe8a   :  { %1249 = vadd.xlane.f32.xlu0 %v1248_v42 }
 0xea4   :  { %v1253_v43 = vpop.xlane.xlu1 %1252 }
 0xea5   :  { %2432 = vrcp.f32 %v1253_v43 }
 0xea6   :  { %v1256_v44 = vpop.xlane.xlu0 %1255 }
 0xea7   :  { %2434 = vrcp.f32 %v1256_v44 }
 0xeaf   :  { %v2433_v50 = vpop.eup %2432 }
 0xeb1   :  { %v2435_v46 = vpop.eup %2434 }
 0xf0d   :  { %v1424_v45 = vpop.xlane.xlu1 %1423 }
 0xf0e   :  { %2436 = vrcp.f32 %v1424_v45  ;;  %v2355_v45 = vld [vmem:[#allocation10 + $0x10] sm:$0xff]  }
 0xf0f   :  { %v1427_v47 = vpop.xlane.xlu0 %1426 }
 0xf11   :  { %v1430_v48 = vpop.xlane.xlu1 %1429 }
 0xf12   :  { %2438 = vrcp.f32 %v1430_v48 }
 0xf13   :  { %v1433_v51 = vpop.xlane.xlu0 %1432 }
 0xf14   :  { %2440 = vrcp.f32 %v1433_v51 }
 0xf15   :  { %2442 = vrcp.f32 %v1427_v47  ;;  %v1247_v12 = vpop.xlane.xlu1 %1246  ;;  %v2356_v47 = vld [vmem:[#allocation8 + $0x18] sm:$0xff]  }
 0xf16   :  { %2444 = vrcp.f32 %v1247_v12 }
 0xf17   :  { %v1250_v13 = vpop.xlane.xlu0 %1249 }
 0xf18   :  { %v2437_v56 = vpop.eup %2436  ;;  %2446 = vrcp.f32 %v1250_v13 }
 0xf1c   :  { %v2439_v11 = vpop.eup %2438 }
 0xf1e   :  { %v2441_v61 = vpop.eup %2440 }
 0xf1f   :  { %v2443_v60 = vpop.eup %2442 }
 0xf20   :  { %v2445_v15 = vpop.eup %2444 }
 0xf22   :  { %v2447_v18 = vpop.eup %2446 }
 0xf4b   :  { %v2211_v49 = vpop.f32.mrb[28].mxu0 }
 0xf4c   :  { %v1302_v52 = vpop.f32.mrb[29].mxu0  ;;  %v1323_v54 = vmul.f32 %v2433_v50, %v2211_v49 }
 0xf4d   :  { %v2212_v53 = vpop.f32.mrb[30].mxu0  ;;  %v1321_v20 = vmul.f32 %v2445_v15, %v1302_v52 }
 0xf4e   :  { %v1324_v55 = vmul.f32 %v2435_v46, %v2212_v53  ;;  %v1305_v9 = vpop.f32.mrb[31].mxu0 }
 0xf4f   :  { %v1322_v21 = vmul.f32 %v2447_v18, %v1305_v9  ;;  %v2004_v9 = vld [vmem:[#allocation7 + $0x1] ss:$0 sm:$0xff] }
 0xf50   :  { %v2319_v58 = vpack.i.bf16 %v1324_v55, %v1323_v54 }
 0xf52   :  { %2320 = vrot.lane.b32.xlu1 %v2319_v58, %s2610_s28 }
 0xf57   :  { %v2223_v10 = vpop.f32.mrb[32].mxu0 }
 0xf58   :  { %v1479_v26 = vpop.f32.mrb[33].mxu0  ;;  %v1500_v62 = vmul.f32 %v2439_v11, %v2223_v10  ;;  %v2358_v10 = vld [vmem:[%s3194_s11 + $0x20] sm:$0xff]   ;;  %v2359_v11 = vld [vmem:[%s3194_s11 + $0x28] sm:$0xff]  }
 0xf59   :  { %v2224_v57 = vpop.f32.mrb[34].mxu0  ;;  %v1498_v3 = vmul.f32 %v2437_v56, %v1479_v26  ;;  %v2360_v26 = vld [vmem:[%s3194_s11 + $0x30] sm:$0xff]  }
 0xf5a   :  { %v1501_v63 = vmul.f32 %v2441_v61, %v2224_v57  ;;  %v1482_v2 = vpop.f32.mrb[35].mxu0  ;;  %v2361_v61 = vld [vmem:[%s3194_s11 + $0x38] sm:$0xff]  }
 0xf5b   :  { %v1499_v4 = vmul.f32 %v2443_v60, %v1482_v2 }
 0xf5c   :  { %v2329_v5 = vpack.i.bf16 %v1501_v63, %v1500_v62 }
 0xf5d   :  { %v2324_v8 = vpack.i.bf16 %v1499_v4, %v1498_v3 }
 0xf5e   :  { %2330 = vrot.lane.b32.xlu1 %v2329_v5, %s2623_s8 }
 0xf5f   :  { %2325 = vrot.lane.b32.xlu0 %v2324_v8, %s2612_s0 }
 0xfc4   :  { %v2321_v14 = vpop.permute.xlu1 %2320 }
 0xfc5   :  { %v2323_v16 = vunpack.i.h.bf16 %v2321_v14  ;;  %v2322_v17 = vunpack.i.l.bf16 %v2321_v14 }
 0xfc7   :  { %v1526_v25 = vsel %vm316_vm3, %v1321_v20, %v2322_v17  ;;  %v1527_v27 = vsel %vm316_vm3, %v1322_v21, %v2323_v16 }
 0xfd0   :  { %v2331_v19 = vpop.permute.xlu1 %2330 }
 0xfd1   :  { %v2326_v22 = vpop.permute.xlu0 %2325  ;;  %v2333_v28 = vunpack.i.h.bf16 %v2331_v19  ;;  %v2332_v30 = vunpack.i.l.bf16 %v2331_v19 }
 0xfd2   :  { %v2328_v23 = vunpack.i.h.bf16 %v2326_v22  ;;  %v2327_v24 = vunpack.i.l.bf16 %v2326_v22 }
 0xfd4   :  { %v1529_v32 = vsel %vm383_vm5, %v1527_v27, %v2328_v23  ;;  %v1528_v35 = vsel %vm383_vm5, %v1526_v25, %v2327_v24 }
 0xfd5   :  { %v1531_v36 = vsel %vm693_vm9, %v1529_v32, %v2333_v28  ;;  %v1530_v37 = vsel %vm693_vm9, %v1528_v35, %v2332_v30 }
 0xfd6   :  { %v1537_v38 = vpack.c.bf16 %v1531_v36, %v1530_v37 }
 0xfd8   :  { %2230 = vmatmul.mubr.msk.bf16.vlgmr.msra.gmra.mrb[28].mxu1 %vm142_vm0, %v1537_v38 }
 0xfd9   :  { %2245 = vmatprep.mubr.msk.bf16.mxu1 %vm2616_vm1, %v2615_v7  ;;  %2242 = vmatpush3.bf16.msra.mxu1 %v2355_v45 }
 0xfda   :  { %2243 = vmatprep.subr.bf16.mxu1 %v2615_v7 }
0x10ab   :  { %v1587_v39 = vpop.f32.mrb[28].mxu1 }
0x10ac   :  { %v3114_v31 = vadd.f32 %v1587_v39, %v2987_v29  ;;  %v2231_v34 = vpop.f32.mrb[29].mxu1  ;;  %v2354_v29 = vld [vmem:[#allocation8 + $0x10] sm:$0xff]  }
0x10ad   :  { %v1590_v0 = vpop.f32.mrb[30].mxu1  ;;  %2234 = vmatpush3.bf16.msra.mxu0 %v2354_v29  ;;  %v2362_v39 = vld [vmem:[%s3196_s13] sm:$0xff]  }
0x10ae   :  { %v3117_v40 = vadd.f32 %v1590_v0, %v2990_v33  ;;  %v2232_v41 = vpop.f32.mrb[31].mxu1  ;;  %v1598_v1 = vmul.f32 %v3114_v31, %v3114_v31  ;;  %v2357_v33 = vld [vmem:[#allocation10 + $0x18] sm:$0xff]   ;;  %2235 = vmatprep.subr.bf16.mxu0 %v2615_v7 }
0x10af   :  { %2244 = vmatpush3.bf16.msra.mxu1 %v2357_v33 }
0x10b0   :  { %v1600_v42 = vsel %vm142_vm0, %v1598_v1, 0.0  ;;  %v1599_v43 = vmul.f32 %v3117_v40, %v3117_v40  ;;  %2261 = vmatprep.subr.bf16.mxu1 %v2615_v7 }
0x10b1   :  { %1601 = vadd.xlane.f32.xlu1 %v1600_v42  ;;  %2236 = vmatpush3.bf16.msra.mxu0 %v2356_v47 }
0x10b2   :  { %v1603_v44 = vsel %vm142_vm0, %v1599_v43, 0.0  ;;  %2249 = vmatprep.subr.bf16.mxu0 %v2615_v7 }
0x10b3   :  { %1604 = vadd.xlane.f32.xlu0 %v1603_v44 }
0x113e   :  { %v1602_v48 = vpop.xlane.xlu1 %1601 }
0x113f   :  { %v1606_v49 = vmul.f32 0.03125, %v1602_v48 }
0x1140   :  { %v1605_v50 = vpop.xlane.xlu0 %1604 }
0x1141   :  { %v1608_v51 = vadd.f32 1e-06, %v1606_v49  ;;  %v1607_v52 = vmul.f32 0.03125, %v1605_v50 }
0x1143   :  { %2448 = vrsqrt.f32 %v1608_v51  ;;  %v1609_v46 = vadd.f32 1e-06, %v1607_v52 }
0x1145   :  { %2450 = vrsqrt.f32 %v1609_v46 }
0x114d   :  { %v2449_v53 = vpop.eup %2448 }
0x114e   :  { %v1612_v54 = vmul.f32 %v2449_v53, %v3114_v31 }
0x114f   :  { %v2451_v55 = vpop.eup %2450 }
0x1150   :  { %v1613_v58 = vmul.f32 %v2451_v55, %v3117_v40  ;;  %v1620_v59 = vmul.f32 %v2004_v9, %v1612_v54 }
0x1152   :  { %v1621_v6 = vmul.f32 %v2004_v9, %v1613_v58 }
0x1154   :  { %v1627_v56 = vpack.c.bf16 %v1621_v6, %v1620_v59 }
0x1156   :  { %2238 = vmatmul.mubr.msk.bf16.vlgmr.msra.gmra.mrb[36].mxu0 %vm142_vm0, %v1627_v56  ;;  %2246 = vmatmul.mubr.msk.bf16.vlgmr.msra.gmra.mrb[32].mxu1 %vm142_vm0, %v1627_v56 }
0x1157   :  { %2257 = vmatprep.mubr.msk.bf16.mxu0 %vm2616_vm1, %v2615_v7  ;;  %2265 = vmatprep.mubr.msk.bf16.mxu1 %vm2616_vm1, %v2615_v7 }
0x1158   :  { %2250 = vmatpush3.bf16.msra.mxu0 %v2358_v10  ;;  %2262 = vmatpush3.bf16.msra.mxu1 %v2362_v39 }
0x1159   :  { %2251 = vmatprep.subr.bf16.mxu0 %v2615_v7  ;;  %2263 = vmatprep.subr.bf16.mxu1 %v2615_v7 }
0x115c   :  { %2252 = vmatpush3.bf16.msra.mxu0 %v2359_v11 }
0x115d   :  { %2253 = vmatprep.subr.bf16.mxu0 %v2615_v7 }
0x1160   :  { %2254 = vmatpush3.bf16.msra.mxu0 %v2360_v26 }
0x1161   :  { %2255 = vmatprep.subr.bf16.mxu0 %v2615_v7  ;;  %v2026_v7 = vld [vmem:[%s3195_s12] ss:$0 sm:$0xff] }
0x1164   :  { %2256 = vmatpush3.bf16.msra.mxu0 %v2361_v61 }
0x1229   :  { %v1677_v57 = vpop.f32.mrb[36].mxu0  ;;  %v1735_v60 = vpop.f32.mrb[32].mxu1 }
0x122a   :  { %v2011_v62 = vmul.f32 -1.442695, %v1677_v57  ;;  %v2239_v63 = vpop.f32.mrb[37].mxu0  ;;  %v2247_v2 = vpop.f32.mrb[33].mxu1 }
0x122b   :  { %v1680_v3 = vpop.f32.mrb[38].mxu0  ;;  %v1738_v4 = vpop.f32.mrb[34].mxu1 }
0x122c   :  { %2452 = vpow2.f32 %v2011_v62  ;;  %v2012_v5 = vmul.f32 -1.442695, %v1680_v3  ;;  %v2240_v8 = vpop.f32.mrb[39].mxu0  ;;  %v2248_v12 = vpop.f32.mrb[35].mxu1 }
0x122e   :  { %2454 = vpow2.f32 %v2012_v5 }
0x1236   :  { %v2453_v13 = vpop.eup %2452 }
0x1237   :  { %v1748_v14 = vadd.f32 1.0, %v2453_v13 }
0x1238   :  { %v2455_v15 = vpop.eup %2454 }
0x1239   :  { %2456 = vrcp.f32 %v1748_v14  ;;  %v1749_v16 = vadd.f32 1.0, %v2455_v15 }
0x123b   :  { %2458 = vrcp.f32 %v1749_v16 }
0x1243   :  { %v2457_v17 = vpop.eup %2456 }
0x1244   :  { %v1754_v18 = vmul.f32 %v2457_v17, %v1677_v57 }
0x1245   :  { %v2459_v19 = vpop.eup %2458 }
0x1246   :  { %v1756_v20 = vmul.f32 %v1754_v18, %v1735_v60  ;;  %v1755_v21 = vmul.f32 %v2459_v19, %v1680_v3 }
0x1248   :  { %v1757_v22 = vmul.f32 %v1755_v21, %v1738_v4 }
0x124a   :  { %v1767_v23 = vpack.c.bf16 %v1757_v22, %v1756_v20 }
0x124c   :  { %2258 = vmatmul.mubr.msk.bf16.vlgmr.msra.gmra.mrb[40].mxu0 %vm254_vm2, %v1767_v23 }
0x131f   :  { %v1829_v24 = vpop.f32.mrb[40].mxu0 }
0x1320   :  { %v1836_v25 = vadd.f32 %v1829_v24, %v3114_v31  ;;  %v2259_v27 = vpop.f32.mrb[41].mxu0  ;;  %v2363_v31 = vld [vmem:[%s3196_s13 + $0x8] sm:$0xff]   ;;  %s2624_s13 = smov [#allocation11]  }
0x1321   :  { %v1832_v28 = vpop.f32.mrb[42].mxu0  ;;  %2264 = vmatpush3.bf16.msra.mxu1 %v2363_v31  ;;  %s1931_s16 = sshll.u32 %s2624_s13, 4  ;;  %s1932_s16 = int_to_ptr.vmem [resolvable:$true] %s1931_s16 }
0x1322   :  { %v1837_v30 = vadd.f32 %v1832_v28, %v3117_v40  ;;  %v2260_v32 = vpop.f32.mrb[43].mxu0  ;;  %v1839_v35 = vmul.f32 %v1836_v25, %v1836_v25  ;;  %s2574_s17 = scalar_lea.vmem %s1932_s16, 256  ;;  %p2579_p13 = scmp.lt.s32.totalorder %s1932_s16, %s1932_s16 }
0x1323   :  { %p2575_p12 = scmp.ne.s32.totalorder %s1932_s16, %s2574_s17  ;;  %p2580_p0 = scmp.lt.s32.totalorder %s2574_s17, %s2574_s17 }
0x1324   :  { %v1841_v36 = vsel %vm142_vm0, %v1839_v35, 0.0  ;;  %v1840_v37 = vmul.f32 %v1837_v30, %v1837_v30 }
0x1325   :  { %1842 = vadd.xlane.f32.xlu0 %v1841_v36  ;;  %p2581_p1 = por %p2580_p0, %p2579_p13 }
0x1326   :  { %v1844_v38 = vsel %vm142_vm0, %v1840_v37, 0.0 }
0x1327   :  { %1845 = vadd.xlane.f32.xlu1 %v1844_v38  ;;  %p2582_p2 = pnand %p2581_p1, %p2575_p12 }
0x13b2   :  { %v1843_v34 = vpop.xlane.xlu0 %1842 }
0x13b3   :  { %v1847_v0 = vmul.f32 0.03125, %v1843_v34 }
0x13b4   :  { %v1846_v40 = vpop.xlane.xlu1 %1845 }
0x13b5   :  { %v1849_v41 = vadd.f32 1e-06, %v1847_v0  ;;  %v1848_v1 = vmul.f32 0.03125, %v1846_v40 }
0x13b7   :  { %2460 = vrsqrt.f32 %v1849_v41  ;;  %v1850_v42 = vadd.f32 1e-06, %v1848_v1 }
0x13b9   :  { %2462 = vrsqrt.f32 %v1850_v42 }
0x13c1   :  { %v2461_v43 = vpop.eup %2460 }
0x13c2   :  { %v1853_v44 = vmul.f32 %v2461_v43, %v1836_v25 }
0x13c3   :  { %v2463_v29 = vpop.eup %2462 }
0x13c4   :  { %v1854_v45 = vmul.f32 %v2463_v29, %v1837_v30  ;;  %v1861_v47 = vmul.f32 %v2026_v7, %v1853_v44 }
0x13c6   :  { %v1862_v33 = vmul.f32 %v2026_v7, %v1854_v45 }
0x13c8   :  { %v1867_v48 = vpack.c.bf16 %v1862_v33, %v1861_v47 }
0x13ca   :  { %2266 = vmatmul.mubr.msk.bf16.vlgmr.msra.gmra.mrb[36].mxu1 %vm142_vm0, %v1867_v48 }
0x149d   :  { %v1917_v49 = vpop.f32.mrb[36].mxu1 }
0x149e   :  { %1924 = vst [vmem:[#allocation11] sm:$0xff] %v1917_v49  ;;  %v2267_v50 = vpop.f32.mrb[37].mxu1 }
0x149f   :  { %v1920_v51 = vpop.f32.mrb[38].mxu1 }
0x14a0   :  { %1925 = vst [vmem:[#allocation11 + $0x8] sm:$0xff] %v1920_v51  ;;  %v2268_v52 = vpop.f32.mrb[39].mxu1 }
0x14a1   :  { %2585 = shalt.err (!%p2582_p2)
}
0x14a2   :  { %s2586_s30 = scalar_lea.hbm %s3197_s14, 256 }
0x14a3   :  { %p2587_p3 = scmp.ne.s32.totalorder %s3197_s14, %s2586_s30  ;;  %p2590_p4 = scmp.lt.u32.totalorder %s2586_s30, %s3197_s14 }
0x14a5   :  { %p2592_p5 = pnand %p2590_p4, %p2587_p3 }
0x14a7   :  { %2595 = shalt.err (!%p2592_p5)
}
0x14a8   :  { %1937 = dma.vmem_to_hbm [thread:$0]  %s1932_s16, 256, %s3197_s14, [#allocation4], %s2609_s9, %s2609_s9, %s2610_s28  }
0x14a9   :  { %2602 = dma.done.wait [#allocation4], 256  }
0x14aa   :  { %2603 = vsyncadd [#allocation4], 4294967040 }
0x14ab   :  { %1941 = vsyncpa [#allocation3], 1 }
0x14ac   :  { %1942 = vsyncpa [#allocation6], 1 }
0x14ad   :  { %1943 = vsyncpa [#allocation9], 1 }
0x14ae   :  { %1944 = vsyncpa [#allocation4], 1 }

</bundles_post_ra>
